<compile_context>
chip_gen: v7x
topology: tpu7x:2x2x1
jax: 0.10.0
libtpu: 0.0.40
codegen_flags: <defaults>
</compile_context>

<pallas_src>
import jax
import jax.numpy as jnp
from jax.experimental import pallas as pl
from jax.experimental.pallas import tpu as pltpu

# ---- model dims (small, consistent with the forward pass) -------------------
B, S, D = 2, 8, 32          # batch, sequence length, embed dim
H = 4                       # attention heads
HD = D // H                 # head dim
F = 64                      # MLP hidden dim
BS = B * S                  # batch folded into rows
R = BS // 4                 # rows of the lane-dense (R, 4*D)=(4,128) output slab
MASK = -1e30


# =============================== kernel helpers ==============================
def _layernorm(x, gamma, beta, eps=1e-5):
    # x: (BS, D) f32; gamma/beta: (1, D) f32
    mu = jnp.mean(x, axis=-1, keepdims=True)
    xc = x - mu
    var = jnp.mean(xc * xc, axis=-1, keepdims=True)
    return xc * jax.lax.rsqrt(var + eps) * gamma + beta


def _attention(q, k, v, wo_b, bias):
    """Multi-head attention on flattened (BS, D) f32 activations.

    Heads are static lane slices (no transpose relayout).  The four per-head
    contexts are lane-concatenated and pushed through ONE fused output
    projection.  Matmul operands are cast to bf16; bias add, softmax and
    accumulation stay in f32.  `bias` is a (BS, BS) block-diagonal batch mask
    (0 within a batch element, -1e30 across batch elements)."""
    scale = 1.0 / float(HD) ** 0.5
    ctx = []
    for h in range(H):                           # static unroll, static slices
        qh = q[:, h * HD:(h + 1) * HD].astype(jnp.bfloat16)
        kh = k[:, h * HD:(h + 1) * HD].astype(jnp.bfloat16)
        vh = v[:, h * HD:(h + 1) * HD].astype(jnp.bfloat16)
        s = jax.lax.dot_general(qh, kh, (((1,), (1,)), ((), ())),
                                preferred_element_type=jnp.float32)
        s = s * scale + bias
        s = s - jnp.max(s, axis=-1, keepdims=True)
        p = jnp.exp(s)
        p = p * pl.reciprocal(jnp.sum(p, axis=-1, keepdims=True), approx=True)
        ctx.append(jnp.dot(p.astype(jnp.bfloat16), vh,
                           preferred_element_type=jnp.float32))
    ctx = jnp.concatenate(ctx, axis=-1)          # (BS, D): one lane concat
    return jnp.dot(ctx.astype(jnp.bfloat16), wo_b,        # fused output proj
                   preferred_element_type=jnp.float32)


def _encoder_branch(x, w_b, w1_b, w2_b, misc, bias):
    """Pre-LN encoder block.  w_b: (D,4D) bf16 = [wq|wk|wv|wo];
    w1_b: (D,F) bf16; w2_b: (F,D) bf16; misc: (6,F) f32 = packed LN/bias slab."""
    g1, be1 = misc[0:1, :D], misc[1:2, :D]
    g2, be2 = misc[2:3, :D], misc[3:4, :D]
    b1, b2 = misc[4:5, :], misc[5:6, :D]

    h1 = _layernorm(x, g1, be1)
    qkv = jnp.dot(h1.astype(jnp.bfloat16), w_b[:, :3 * D],     # fused QKV
                  preferred_element_type=jnp.float32)
    x = x + _attention(qkv[:, :D], qkv[:, D:2 * D], qkv[:, 2 * D:],
                       w_b[:, 3 * D:], bias)

    h2 = _layernorm(x, g2, be2)
    m = jnp.dot(h2.astype(jnp.bfloat16), w1_b,
                preferred_element_type=jnp.float32) + b1
    # TODO(synk): PyTorch nn.GELU defaults to exact erf; tanh approx used here.
    m = jax.nn.gelu(m, approximate=True)
    x = x + jnp.dot(m.astype(jnp.bfloat16), w2_b,
                    preferred_element_type=jnp.float32) + b2
    return x


# =================================== kernel ==================================
def fused_block_kernel(hr_ref, lr_ref, scd_w_ref, enc_w_ref, enc_w1_ref,
                       enc_w2_ref, enc_misc_ref, o_ref):
    hr = hr_ref[...]                      # (BS, D) f32
    lr = lr_ref[...]                      # (BS, D) f32

    # ---- block-diagonal batch mask, built in-kernel (saves an operand/DMA) --
    rid = jax.lax.broadcasted_iota(jnp.int32, (BS, BS), 0).astype(jnp.float32)
    cid = jax.lax.broadcasted_iota(jnp.int32, (BS, BS), 1).astype(jnp.float32)
    same = jnp.floor(rid * (1.0 / S)) == jnp.floor(cid * (1.0 / S))
    bias = jnp.where(same, 0.0, MASK).astype(jnp.float32)

    # ---- SCD: cross attention (Q from hr, K/V from lr), computed ONCE -------
    scd_w = scd_w_ref[...].astype(jnp.bfloat16)        # (D, 4D) = [wq|wk|wv|wo]
    q = jnp.dot(hr.astype(jnp.bfloat16), scd_w[:, :D],
                preferred_element_type=jnp.float32)
    kv = jnp.dot(lr.astype(jnp.bfloat16), scd_w[:, D:3 * D],   # fused K|V proj
                 preferred_element_type=jnp.float32)
    f_sc = _attention(q, kv[:, :D], kv[:, D:], scd_w[:, 3 * D:], bias)

    # ---- CEEB (branch 0) and SEB (branch 1): both in one body ---------------
    x_c = _encoder_branch(f_sc + hr,
                          enc_w_ref[0].astype(jnp.bfloat16),
                          enc_w1_ref[0].astype(jnp.bfloat16),
                          enc_w2_ref[0].astype(jnp.bfloat16),
                          enc_misc_ref[0], bias)
    x_s = _encoder_branch(f_sc + lr,
                          enc_w_ref[1].astype(jnp.bfloat16),
                          enc_w1_ref[1].astype(jnp.bfloat16),
                          enc_w2_ref[1].astype(jnp.bfloat16),
                          enc_misc_ref[1], bias)

    # ---- lane-dense (2R, 4D) = (8, 128) output slab --------------------------
    # o_ref[i, j*D:(j+1)*D] = x[j*R + i]; un-packed in the wrapper.
    for j in range(4):
        o_ref[0:R, j * D:(j + 1) * D] = x_c[j * R:(j + 1) * R, :]
        o_ref[R:2 * R, j * D:(j + 1) * D] = x_s[j * R:(j + 1) * R, :]


# ============================= pallas_call wrapper ===========================
def _unpack(dense, b, s, d):
    # invert the kernel's lane packing: dense[i, j*D:(j+1)*D] == x[j*R + i]
    return dense.reshape(R, 4, D).transpose(1, 0, 2).reshape(b, s, d)


@jax.jit
def transformer_block(f_hr_emb, f_lr_emb, params):
    b, s, d = f_hr_emb.shape
    hr = f_hr_emb.reshape(b * s, d)
    lr = f_lr_emb.reshape(b * s, d)

    vmem = pl.BlockSpec(memory_space=pltpu.MemorySpace.VMEM)
    out = pl.pallas_call(
        fused_block_kernel,
        out_shape=jax.ShapeDtypeStruct((2 * R, 4 * D), jnp.float32),  # (8, 128)
        in_specs=[vmem] * 7,
        out_specs=vmem,
    )(hr, lr, params["scd_w"], params["enc_w"], params["enc_w1"],
      params["enc_w2"], params["enc_misc"])

    f_contour = _unpack(out[:R], b, s, d)
    f_semantic = _unpack(out[R:], b, s, d)
    return f_contour, f_semantic


# ============================ deterministic params ===========================
def _pad_lanes(v):
    # pad a (D,)/(F,) vector to F lanes
    if v.shape[0] < F:
        v = jnp.concatenate([v, jnp.zeros((F - v.shape[0],), jnp.float32)])
    return v


def _attn_weights(key, scale=0.02):
    return tuple(scale * jax.random.normal(k, (D, D), jnp.float32)
                 for k in jax.random.split(key, 4))


def _encoder_params(key, scale=0.02):
    ka, k1, k2 = jax.random.split(key, 3)
    wq, wk, wv, wo = _attn_weights(ka, scale)
    w = jnp.concatenate([wq, wk, wv, wo], axis=1)               # (D, 4D)
    w1 = scale * jax.random.normal(k1, (D, F), jnp.float32)     # (D, F)
    w2 = scale * jax.random.normal(k2, (F, D), jnp.float32)     # (F, D)
    misc = jnp.stack([_pad_lanes(jnp.ones((D,), jnp.float32)),   # LN1 gamma
                      _pad_lanes(jnp.zeros((D,), jnp.float32)),  # LN1 beta
                      _pad_lanes(jnp.ones((D,), jnp.float32)),   # LN2 gamma
                      _pad_lanes(jnp.zeros((D,), jnp.float32)),  # LN2 beta
                      jnp.zeros((F,), jnp.float32),              # MLP b1
                      _pad_lanes(jnp.zeros((D,), jnp.float32))]) # MLP b2 -> (6,F)
    return w, w1, w2, misc


def init_params(key):
    k_scd, k_ceeb, k_seb = jax.random.split(key, 3)
    wq, wk, wv, wo = _attn_weights(k_scd)
    scd_w = jnp.concatenate([wq, wk, wv, wo], axis=1)           # (D, 4D)
    ceeb = _encoder_params(k_ceeb)
    seb = _encoder_params(k_seb)
    enc_w, enc_w1, enc_w2, enc_misc = (jnp.stack([c, s_])       # branch axis
                                       for c, s_ in zip(ceeb, seb))
    return {"scd_w": scd_w, "enc_w": enc_w, "enc_w1": enc_w1,
            "enc_w2": enc_w2, "enc_misc": enc_misc}


# ==================================== main ===================================
if __name__ == "__main__":
    key = jax.random.PRNGKey(0)
    k_hr, k_lr, k_p = jax.random.split(key, 3)
    f_hr_emb = jax.random.normal(k_hr, (B, S, D), jnp.float32)
    f_lr_emb = jax.random.normal(k_lr, (B, S, D), jnp.float32)
    params = init_params(k_p)

    f_contour, f_semantic = transformer_block(f_hr_emb, f_lr_emb, params)
    jax.block_until_ready((f_contour, f_semantic))

    assert f_contour.shape == (B, S, D) and f_semantic.shape == (B, S, D)
    assert bool(jnp.all(jnp.isfinite(f_contour)))
    assert bool(jnp.all(jnp.isfinite(f_semantic)))
    print("KERNEL_OK")
</pallas_src>

<mosaic_0001>
module attributes {stable_mosaic.version = 11 : i64} {
  func.func @fused_block_kernel(%arg0: memref<16x32xf32, #tpu.memory_space<vmem>>, %arg1: memref<16x32xf32, #tpu.memory_space<vmem>>, %arg2: memref<32x128xf32, #tpu.memory_space<vmem>>, %arg3: memref<2x32x128xf32, #tpu.memory_space<vmem>>, %arg4: memref<2x32x64xf32, #tpu.memory_space<vmem>>, %arg5: memref<2x64x32xf32, #tpu.memory_space<vmem>>, %arg6: memref<2x6x64xf32, #tpu.memory_space<vmem>>, %arg7: memref<8x128xf32, #tpu.memory_space<vmem>>) attributes {dimension_semantics = [], scalar_prefetch = 0 : i64, scratch_operands = 0 : i64, tpu.core_type = #tpu.core_type<tc>} {
    %c0 = arith.constant 0 : index
    %c0_0 = arith.constant 0 : index
    %0 = vector.load %arg0[%c0, %c0_0] : memref<16x32xf32, #tpu.memory_space<vmem>>, vector<16x32xf32>
    %c0_1 = arith.constant 0 : index
    %c0_2 = arith.constant 0 : index
    %1 = vector.load %arg1[%c0_1, %c0_2] : memref<16x32xf32, #tpu.memory_space<vmem>>, vector<16x32xf32>
    %2 = tpu.iota {dimensions = array<i32: 0>} : vector<16x16xi32>
    %3 = arith.sitofp %2 : vector<16x16xi32> to vector<16x16xf32>
    %4 = tpu.iota {dimensions = array<i32: 1>} : vector<16x16xi32>
    %5 = arith.sitofp %4 : vector<16x16xi32> to vector<16x16xf32>
    %cst = arith.constant 1.250000e-01 : f32
    %6 = vector.broadcast %cst : f32 to vector<16x16xf32>
    %7 = arith.mulf %3, %6 : vector<16x16xf32>
    %8 = math.floor %7 : vector<16x16xf32>
    %cst_3 = arith.constant 1.250000e-01 : f32
    %9 = vector.broadcast %cst_3 : f32 to vector<16x16xf32>
    %10 = arith.mulf %5, %9 : vector<16x16xf32>
    %11 = math.floor %10 : vector<16x16xf32>
    %12 = arith.cmpf oeq, %8, %11 : vector<16x16xf32>
    %cst_4 = arith.constant 0.000000e+00 : f32
    %cst_5 = arith.constant -1.000000e+30 : f32
    %13 = vector.broadcast %cst_4 : f32 to vector<16x16xf32>
    %14 = vector.broadcast %cst_5 : f32 to vector<16x16xf32>
    %15 = arith.select %12, %13, %14 : vector<16x16xi1>, vector<16x16xf32>
    %c0_6 = arith.constant 0 : index
    %c0_7 = arith.constant 0 : index
    %16 = vector.load %arg2[%c0_6, %c0_7] : memref<32x128xf32, #tpu.memory_space<vmem>>, vector<32x128xf32>
    %17 = arith.truncf %16 : vector<32x128xf32> to vector<32x128xbf16>
    %18 = arith.truncf %0 : vector<16x32xf32> to vector<16x32xbf16>
    %19 = vector.extract_strided_slice %17 {offsets = [0, 0], sizes = [32, 32], strides = [1, 1]} : vector<32x128xbf16> to vector<32x32xbf16>
    %cst_8 = arith.constant dense<0.000000e+00> : vector<16x32xf32>
    %20 = tpu.matmul %18, %19, %cst_8 {dimension_numbers = #tpu.dot_dimension_numbers<[1], [0], [0], [1], [0, 0, 1, 1], [], []>} : vector<16x32xbf16>, vector<32x32xbf16>, vector<16x32xf32> -> vector<16x32xf32>
    %21 = arith.truncf %1 : vector<16x32xf32> to vector<16x32xbf16>
    %22 = vector.extract_strided_slice %17 {offsets = [0, 32], sizes = [32, 64], strides = [1, 1]} : vector<32x128xbf16> to vector<32x64xbf16>
    %cst_9 = arith.constant dense<0.000000e+00> : vector<16x64xf32>
    %23 = tpu.matmul %21, %22, %cst_9 {dimension_numbers = #tpu.dot_dimension_numbers<[1], [0], [0], [1], [0, 0, 1, 1], [], []>} : vector<16x32xbf16>, vector<32x64xbf16>, vector<16x64xf32> -> vector<16x64xf32>
    %24 = vector.extract_strided_slice %23 {offsets = [0, 0], sizes = [16, 32], strides = [1, 1]} : vector<16x64xf32> to vector<16x32xf32>
    %25 = vector.extract_strided_slice %23 {offsets = [0, 32], sizes = [16, 32], strides = [1, 1]} : vector<16x64xf32> to vector<16x32xf32>
    %26 = vector.extract_strided_slice %17 {offsets = [0, 96], sizes = [32, 32], strides = [1, 1]} : vector<32x128xbf16> to vector<32x32xbf16>
    %27 = vector.extract_strided_slice %20 {offsets = [0, 0], sizes = [16, 8], strides = [1, 1]} : vector<16x32xf32> to vector<16x8xf32>
    %28 = arith.truncf %27 : vector<16x8xf32> to vector<16x8xbf16>
    %29 = vector.extract_strided_slice %24 {offsets = [0, 0], sizes = [16, 8], strides = [1, 1]} : vector<16x32xf32> to vector<16x8xf32>
    %30 = arith.truncf %29 : vector<16x8xf32> to vector<16x8xbf16>
    %31 = vector.extract_strided_slice %25 {offsets = [0, 0], sizes = [16, 8], strides = [1, 1]} : vector<16x32xf32> to vector<16x8xf32>
    %32 = arith.truncf %31 : vector<16x8xf32> to vector<16x8xbf16>
    %cst_10 = arith.constant dense<0.000000e+00> : vector<16x16xf32>
    %33 = tpu.matmul %28, %30, %cst_10 {dimension_numbers = #tpu.dot_dimension_numbers<[1], [1], [0], [0], [0, 0, 1, 0], [], []>} : vector<16x8xbf16>, vector<16x8xbf16>, vector<16x16xf32> -> vector<16x16xf32>
    %cst_11 = arith.constant 0.353553385 : f32
    %34 = vector.broadcast %cst_11 : f32 to vector<16x16xf32>
    %35 = arith.mulf %33, %34 : vector<16x16xf32>
    %36 = arith.addf %35, %15 : vector<16x16xf32>
    %cst_12 = arith.constant dense<0xFF800000> : vector<16xf32>
    %37 = vector.multi_reduction <maximumf>, %36, %cst_12 [1] : vector<16x16xf32> to vector<16xf32>
    %38 = vector.shape_cast %37 : vector<16xf32> to vector<16x1xf32>
    %39 = vector.broadcast %38 : vector<16x1xf32> to vector<16x16xf32>
    %40 = arith.subf %36, %39 : vector<16x16xf32>
    %41 = math.exp %40 : vector<16x16xf32>
    %cst_13 = arith.constant dense<0.000000e+00> : vector<16xf32>
    %42 = vector.multi_reduction <add>, %41, %cst_13 [1] : vector<16x16xf32> to vector<16xf32>
    %43 = vector.shape_cast %42 : vector<16xf32> to vector<16x1xf32>
    %44 = tpu.reciprocal %43 {approx = true} : vector<16x1xf32> -> vector<16x1xf32>
    %45 = vector.broadcast %44 : vector<16x1xf32> to vector<16x16xf32>
    %46 = arith.mulf %41, %45 : vector<16x16xf32>
    %47 = arith.truncf %46 : vector<16x16xf32> to vector<16x16xbf16>
    %cst_14 = arith.constant dense<0.000000e+00> : vector<16x8xf32>
    %48 = tpu.matmul %47, %32, %cst_14 {dimension_numbers = #tpu.dot_dimension_numbers<[1], [0], [0], [1], [0, 0, 1, 1], [], []>} : vector<16x16xbf16>, vector<16x8xbf16>, vector<16x8xf32> -> vector<16x8xf32>
    %49 = vector.extract_strided_slice %20 {offsets = [0, 8], sizes = [16, 8], strides = [1, 1]} : vector<16x32xf32> to vector<16x8xf32>
    %50 = arith.truncf %49 : vector<16x8xf32> to vector<16x8xbf16>
    %51 = vector.extract_strided_slice %24 {offsets = [0, 8], sizes = [16, 8], strides = [1, 1]} : vector<16x32xf32> to vector<16x8xf32>
    %52 = arith.truncf %51 : vector<16x8xf32> to vector<16x8xbf16>
    %53 = vector.extract_strided_slice %25 {offsets = [0, 8], sizes = [16, 8], strides = [1, 1]} : vector<16x32xf32> to vector<16x8xf32>
    %54 = arith.truncf %53 : vector<16x8xf32> to vector<16x8xbf16>
    %cst_15 = arith.constant dense<0.000000e+00> : vector<16x16xf32>
    %55 = tpu.matmul %50, %52, %cst_15 {dimension_numbers = #tpu.dot_dimension_numbers<[1], [1], [0], [0], [0, 0, 1, 0], [], []>} : vector<16x8xbf16>, vector<16x8xbf16>, vector<16x16xf32> -> vector<16x16xf32>
    %cst_16 = arith.constant 0.353553385 : f32
    %56 = vector.broadcast %cst_16 : f32 to vector<16x16xf32>
    %57 = arith.mulf %55, %56 : vector<16x16xf32>
    %58 = arith.addf %57, %15 : vector<16x16xf32>
    %cst_17 = arith.constant dense<0xFF800000> : vector<16xf32>
    %59 = vector.multi_reduction <maximumf>, %58, %cst_17 [1] : vector<16x16xf32> to vector<16xf32>
    %60 = vector.shape_cast %59 : vector<16xf32> to vector<16x1xf32>
    %61 = vector.broadcast %60 : vector<16x1xf32> to vector<16x16xf32>
    %62 = arith.subf %58, %61 : vector<16x16xf32>
    %63 = math.exp %62 : vector<16x16xf32>
    %cst_18 = arith.constant dense<0.000000e+00> : vector<16xf32>
    %64 = vector.multi_reduction <add>, %63, %cst_18 [1] : vector<16x16xf32> to vector<16xf32>
    %65 = vector.shape_cast %64 : vector<16xf32> to vector<16x1xf32>
    %66 = tpu.reciprocal %65 {approx = true} : vector<16x1xf32> -> vector<16x1xf32>
    %67 = vector.broadcast %66 : vector<16x1xf32> to vector<16x16xf32>
    %68 = arith.mulf %63, %67 : vector<16x16xf32>
    %69 = arith.truncf %68 : vector<16x16xf32> to vector<16x16xbf16>
    %cst_19 = arith.constant dense<0.000000e+00> : vector<16x8xf32>
    %70 = tpu.matmul %69, %54, %cst_19 {dimension_numbers = #tpu.dot_dimension_numbers<[1], [0], [0], [1], [0, 0, 1, 1], [], []>} : vector<16x16xbf16>, vector<16x8xbf16>, vector<16x8xf32> -> vector<16x8xf32>
    %71 = vector.extract_strided_slice %20 {offsets = [0, 16], sizes = [16, 8], strides = [1, 1]} : vector<16x32xf32> to vector<16x8xf32>
    %72 = arith.truncf %71 : vector<16x8xf32> to vector<16x8xbf16>
    %73 = vector.extract_strided_slice %24 {offsets = [0, 16], sizes = [16, 8], strides = [1, 1]} : vector<16x32xf32> to vector<16x8xf32>
    %74 = arith.truncf %73 : vector<16x8xf32> to vector<16x8xbf16>
    %75 = vector.extract_strided_slice %25 {offsets = [0, 16], sizes = [16, 8], strides = [1, 1]} : vector<16x32xf32> to vector<16x8xf32>
    %76 = arith.truncf %75 : vector<16x8xf32> to vector<16x8xbf16>
    %cst_20 = arith.constant dense<0.000000e+00> : vector<16x16xf32>
    %77 = tpu.matmul %72, %74, %cst_20 {dimension_numbers = #tpu.dot_dimension_numbers<[1], [1], [0], [0], [0, 0, 1, 0], [], []>} : vector<16x8xbf16>, vector<16x8xbf16>, vector<16x16xf32> -> vector<16x16xf32>
    %cst_21 = arith.constant 0.353553385 : f32
    %78 = vector.broadcast %cst_21 : f32 to vector<16x16xf32>
    %79 = arith.mulf %77, %78 : vector<16x16xf32>
    %80 = arith.addf %79, %15 : vector<16x16xf32>
    %cst_22 = arith.constant dense<0xFF800000> : vector<16xf32>
    %81 = vector.multi_reduction <maximumf>, %80, %cst_22 [1] : vector<16x16xf32> to vector<16xf32>
    %82 = vector.shape_cast %81 : vector<16xf32> to vector<16x1xf32>
    %83 = vector.broadcast %82 : vector<16x1xf32> to vector<16x16xf32>
    %84 = arith.subf %80, %83 : vector<16x16xf32>
    %85 = math.exp %84 : vector<16x16xf32>
    %cst_23 = arith.constant dense<0.000000e+00> : vector<16xf32>
    %86 = vector.multi_reduction <add>, %85, %cst_23 [1] : vector<16x16xf32> to vector<16xf32>
    %87 = vector.shape_cast %86 : vector<16xf32> to vector<16x1xf32>
    %88 = tpu.reciprocal %87 {approx = true} : vector<16x1xf32> -> vector<16x1xf32>
    %89 = vector.broadcast %88 : vector<16x1xf32> to vector<16x16xf32>
    %90 = arith.mulf %85, %89 : vector<16x16xf32>
    %91 = arith.truncf %90 : vector<16x16xf32> to vector<16x16xbf16>
    %cst_24 = arith.constant dense<0.000000e+00> : vector<16x8xf32>
    %92 = tpu.matmul %91, %76, %cst_24 {dimension_numbers = #tpu.dot_dimension_numbers<[1], [0], [0], [1], [0, 0, 1, 1], [], []>} : vector<16x16xbf16>, vector<16x8xbf16>, vector<16x8xf32> -> vector<16x8xf32>
    %93 = vector.extract_strided_slice %20 {offsets = [0, 24], sizes = [16, 8], strides = [1, 1]} : vector<16x32xf32> to vector<16x8xf32>
    %94 = arith.truncf %93 : vector<16x8xf32> to vector<16x8xbf16>
    %95 = vector.extract_strided_slice %24 {offsets = [0, 24], sizes = [16, 8], strides = [1, 1]} : vector<16x32xf32> to vector<16x8xf32>
    %96 = arith.truncf %95 : vector<16x8xf32> to vector<16x8xbf16>
    %97 = vector.extract_strided_slice %25 {offsets = [0, 24], sizes = [16, 8], strides = [1, 1]} : vector<16x32xf32> to vector<16x8xf32>
    %98 = arith.truncf %97 : vector<16x8xf32> to vector<16x8xbf16>
    %cst_25 = arith.constant dense<0.000000e+00> : vector<16x16xf32>
    %99 = tpu.matmul %94, %96, %cst_25 {dimension_numbers = #tpu.dot_dimension_numbers<[1], [1], [0], [0], [0, 0, 1, 0], [], []>} : vector<16x8xbf16>, vector<16x8xbf16>, vector<16x16xf32> -> vector<16x16xf32>
    %cst_26 = arith.constant 0.353553385 : f32
    %100 = vector.broadcast %cst_26 : f32 to vector<16x16xf32>
    %101 = arith.mulf %99, %100 : vector<16x16xf32>
    %102 = arith.addf %101, %15 : vector<16x16xf32>
    %cst_27 = arith.constant dense<0xFF800000> : vector<16xf32>
    %103 = vector.multi_reduction <maximumf>, %102, %cst_27 [1] : vector<16x16xf32> to vector<16xf32>
    %104 = vector.shape_cast %103 : vector<16xf32> to vector<16x1xf32>
    %105 = vector.broadcast %104 : vector<16x1xf32> to vector<16x16xf32>
    %106 = arith.subf %102, %105 : vector<16x16xf32>
    %107 = math.exp %106 : vector<16x16xf32>
    %cst_28 = arith.constant dense<0.000000e+00> : vector<16xf32>
    %108 = vector.multi_reduction <add>, %107, %cst_28 [1] : vector<16x16xf32> to vector<16xf32>
    %109 = vector.shape_cast %108 : vector<16xf32> to vector<16x1xf32>
    %110 = tpu.reciprocal %109 {approx = true} : vector<16x1xf32> -> vector<16x1xf32>
    %111 = vector.broadcast %110 : vector<16x1xf32> to vector<16x16xf32>
    %112 = arith.mulf %107, %111 : vector<16x16xf32>
    %113 = arith.truncf %112 : vector<16x16xf32> to vector<16x16xbf16>
    %cst_29 = arith.constant dense<0.000000e+00> : vector<16x8xf32>
    %114 = tpu.matmul %113, %98, %cst_29 {dimension_numbers = #tpu.dot_dimension_numbers<[1], [0], [0], [1], [0, 0, 1, 1], [], []>} : vector<16x16xbf16>, vector<16x8xbf16>, vector<16x8xf32> -> vector<16x8xf32>
    %115 = tpu.concatenate %48, %70, %92, %114 in 1 : vector<16x8xf32>, vector<16x8xf32>, vector<16x8xf32>, vector<16x8xf32> -> vector<16x32xf32>
    %116 = arith.truncf %115 : vector<16x32xf32> to vector<16x32xbf16>
    %cst_30 = arith.constant dense<0.000000e+00> : vector<16x32xf32>
    %117 = tpu.matmul %116, %26, %cst_30 {dimension_numbers = #tpu.dot_dimension_numbers<[1], [0], [0], [1], [0, 0, 1, 1], [], []>} : vector<16x32xbf16>, vector<32x32xbf16>, vector<16x32xf32> -> vector<16x32xf32>
    %118 = arith.addf %117, %0 : vector<16x32xf32>
    %c0_31 = arith.constant 0 : index
    %c0_32 = arith.constant 0 : index
    %c0_33 = arith.constant 0 : index
    %119 = vector.load %arg3[%c0_31, %c0_32, %c0_33] : memref<2x32x128xf32, #tpu.memory_space<vmem>>, vector<1x32x128xf32>
    %120 = vector.shape_cast %119 : vector<1x32x128xf32> to vector<32x128xf32>
    %121 = arith.truncf %120 : vector<32x128xf32> to vector<32x128xbf16>
    %c0_34 = arith.constant 0 : index
    %c0_35 = arith.constant 0 : index
    %c0_36 = arith.constant 0 : index
    %122 = vector.load %arg4[%c0_34, %c0_35, %c0_36] : memref<2x32x64xf32, #tpu.memory_space<vmem>>, vector<1x32x64xf32>
    %123 = vector.shape_cast %122 : vector<1x32x64xf32> to vector<32x64xf32>
    %124 = arith.truncf %123 : vector<32x64xf32> to vector<32x64xbf16>
    %c0_37 = arith.constant 0 : index
    %c0_38 = arith.constant 0 : index
    %c0_39 = arith.constant 0 : index
    %125 = vector.load %arg5[%c0_37, %c0_38, %c0_39] : memref<2x64x32xf32, #tpu.memory_space<vmem>>, vector<1x64x32xf32>
    %126 = vector.shape_cast %125 : vector<1x64x32xf32> to vector<64x32xf32>
    %127 = arith.truncf %126 : vector<64x32xf32> to vector<64x32xbf16>
    %c0_40 = arith.constant 0 : index
    %c0_41 = arith.constant 0 : index
    %c0_42 = arith.constant 0 : index
    %128 = vector.load %arg6[%c0_40, %c0_41, %c0_42] : memref<2x6x64xf32, #tpu.memory_space<vmem>>, vector<1x6x64xf32>
    %129 = vector.shape_cast %128 : vector<1x6x64xf32> to vector<6x64xf32>
    %130 = vector.extract_strided_slice %129 {offsets = [0, 0], sizes = [1, 32], strides = [1, 1]} : vector<6x64xf32> to vector<1x32xf32>
    %131 = vector.extract_strided_slice %129 {offsets = [1, 0], sizes = [1, 32], strides = [1, 1]} : vector<6x64xf32> to vector<1x32xf32>
    %132 = vector.extract_strided_slice %129 {offsets = [2, 0], sizes = [1, 32], strides = [1, 1]} : vector<6x64xf32> to vector<1x32xf32>
    %133 = vector.extract_strided_slice %129 {offsets = [3, 0], sizes = [1, 32], strides = [1, 1]} : vector<6x64xf32> to vector<1x32xf32>
    %134 = vector.extract_strided_slice %129 {offsets = [4, 0], sizes = [1, 64], strides = [1, 1]} : vector<6x64xf32> to vector<1x64xf32>
    %135 = vector.extract_strided_slice %129 {offsets = [5, 0], sizes = [1, 32], strides = [1, 1]} : vector<6x64xf32> to vector<1x32xf32>
    %cst_43 = arith.constant dense<0.000000e+00> : vector<16xf32>
    %136 = vector.multi_reduction <add>, %118, %cst_43 [1] : vector<16x32xf32> to vector<16xf32>
    %137 = vector.shape_cast %136 : vector<16xf32> to vector<16x1xf32>
    %cst_44 = arith.constant 3.200000e+01 : f32
    %138 = vector.broadcast %cst_44 : f32 to vector<16x1xf32>
    %139 = arith.divf %137, %138 : vector<16x1xf32>
    %140 = vector.broadcast %139 : vector<16x1xf32> to vector<16x32xf32>
    %141 = arith.subf %118, %140 : vector<16x32xf32>
    %142 = arith.mulf %141, %141 : vector<16x32xf32>
    %cst_45 = arith.constant dense<0.000000e+00> : vector<16xf32>
    %143 = vector.multi_reduction <add>, %142, %cst_45 [1] : vector<16x32xf32> to vector<16xf32>
    %144 = vector.shape_cast %143 : vector<16xf32> to vector<16x1xf32>
    %cst_46 = arith.constant 3.200000e+01 : f32
    %145 = vector.broadcast %cst_46 : f32 to vector<16x1xf32>
    %146 = arith.divf %144, %145 : vector<16x1xf32>
    %cst_47 = arith.constant 9.99999974E-6 : f32
    %147 = vector.broadcast %cst_47 : f32 to vector<16x1xf32>
    %148 = arith.addf %146, %147 : vector<16x1xf32>
    %149 = math.rsqrt %148 : vector<16x1xf32>
    %150 = vector.broadcast %149 : vector<16x1xf32> to vector<16x32xf32>
    %151 = arith.mulf %141, %150 : vector<16x32xf32>
    %152 = vector.broadcast %130 : vector<1x32xf32> to vector<16x32xf32>
    %153 = arith.mulf %151, %152 : vector<16x32xf32>
    %154 = vector.broadcast %131 : vector<1x32xf32> to vector<16x32xf32>
    %155 = arith.addf %153, %154 : vector<16x32xf32>
    %156 = arith.truncf %155 : vector<16x32xf32> to vector<16x32xbf16>
    %157 = vector.extract_strided_slice %121 {offsets = [0, 0], sizes = [32, 96], strides = [1, 1]} : vector<32x128xbf16> to vector<32x96xbf16>
    %cst_48 = arith.constant dense<0.000000e+00> : vector<16x96xf32>
    %158 = tpu.matmul %156, %157, %cst_48 {dimension_numbers = #tpu.dot_dimension_numbers<[1], [0], [0], [1], [0, 0, 1, 1], [], []>} : vector<16x32xbf16>, vector<32x96xbf16>, vector<16x96xf32> -> vector<16x96xf32>
    %159 = vector.extract_strided_slice %158 {offsets = [0, 0], sizes = [16, 32], strides = [1, 1]} : vector<16x96xf32> to vector<16x32xf32>
    %160 = vector.extract_strided_slice %158 {offsets = [0, 32], sizes = [16, 32], strides = [1, 1]} : vector<16x96xf32> to vector<16x32xf32>
    %161 = vector.extract_strided_slice %158 {offsets = [0, 64], sizes = [16, 32], strides = [1, 1]} : vector<16x96xf32> to vector<16x32xf32>
    %162 = vector.extract_strided_slice %121 {offsets = [0, 96], sizes = [32, 32], strides = [1, 1]} : vector<32x128xbf16> to vector<32x32xbf16>
    %163 = vector.extract_strided_slice %159 {offsets = [0, 0], sizes = [16, 8], strides = [1, 1]} : vector<16x32xf32> to vector<16x8xf32>
    %164 = arith.truncf %163 : vector<16x8xf32> to vector<16x8xbf16>
    %165 = vector.extract_strided_slice %160 {offsets = [0, 0], sizes = [16, 8], strides = [1, 1]} : vector<16x32xf32> to vector<16x8xf32>
    %166 = arith.truncf %165 : vector<16x8xf32> to vector<16x8xbf16>
    %167 = vector.extract_strided_slice %161 {offsets = [0, 0], sizes = [16, 8], strides = [1, 1]} : vector<16x32xf32> to vector<16x8xf32>
    %168 = arith.truncf %167 : vector<16x8xf32> to vector<16x8xbf16>
    %cst_49 = arith.constant dense<0.000000e+00> : vector<16x16xf32>
    %169 = tpu.matmul %164, %166, %cst_49 {dimension_numbers = #tpu.dot_dimension_numbers<[1], [1], [0], [0], [0, 0, 1, 0], [], []>} : vector<16x8xbf16>, vector<16x8xbf16>, vector<16x16xf32> -> vector<16x16xf32>
    %cst_50 = arith.constant 0.353553385 : f32
    %170 = vector.broadcast %cst_50 : f32 to vector<16x16xf32>
    %171 = arith.mulf %169, %170 : vector<16x16xf32>
    %172 = arith.addf %171, %15 : vector<16x16xf32>
    %cst_51 = arith.constant dense<0xFF800000> : vector<16xf32>
    %173 = vector.multi_reduction <maximumf>, %172, %cst_51 [1] : vector<16x16xf32> to vector<16xf32>
    %174 = vector.shape_cast %173 : vector<16xf32> to vector<16x1xf32>
    %175 = vector.broadcast %174 : vector<16x1xf32> to vector<16x16xf32>
    %176 = arith.subf %172, %175 : vector<16x16xf32>
    %177 = math.exp %176 : vector<16x16xf32>
    %cst_52 = arith.constant dense<0.000000e+00> : vector<16xf32>
    %178 = vector.multi_reduction <add>, %177, %cst_52 [1] : vector<16x16xf32> to vector<16xf32>
    %179 = vector.shape_cast %178 : vector<16xf32> to vector<16x1xf32>
    %180 = tpu.reciprocal %179 {approx = true} : vector<16x1xf32> -> vector<16x1xf32>
    %181 = vector.broadcast %180 : vector<16x1xf32> to vector<16x16xf32>
    %182 = arith.mulf %177, %181 : vector<16x16xf32>
    %183 = arith.truncf %182 : vector<16x16xf32> to vector<16x16xbf16>
    %cst_53 = arith.constant dense<0.000000e+00> : vector<16x8xf32>
    %184 = tpu.matmul %183, %168, %cst_53 {dimension_numbers = #tpu.dot_dimension_numbers<[1], [0], [0], [1], [0, 0, 1, 1], [], []>} : vector<16x16xbf16>, vector<16x8xbf16>, vector<16x8xf32> -> vector<16x8xf32>
    %185 = vector.extract_strided_slice %159 {offsets = [0, 8], sizes = [16, 8], strides = [1, 1]} : vector<16x32xf32> to vector<16x8xf32>
    %186 = arith.truncf %185 : vector<16x8xf32> to vector<16x8xbf16>
    %187 = vector.extract_strided_slice %160 {offsets = [0, 8], sizes = [16, 8], strides = [1, 1]} : vector<16x32xf32> to vector<16x8xf32>
    %188 = arith.truncf %187 : vector<16x8xf32> to vector<16x8xbf16>
    %189 = vector.extract_strided_slice %161 {offsets = [0, 8], sizes = [16, 8], strides = [1, 1]} : vector<16x32xf32> to vector<16x8xf32>
    %190 = arith.truncf %189 : vector<16x8xf32> to vector<16x8xbf16>
    %cst_54 = arith.constant dense<0.000000e+00> : vector<16x16xf32>
    %191 = tpu.matmul %186, %188, %cst_54 {dimension_numbers = #tpu.dot_dimension_numbers<[1], [1], [0], [0], [0, 0, 1, 0], [], []>} : vector<16x8xbf16>, vector<16x8xbf16>, vector<16x16xf32> -> vector<16x16xf32>
    %cst_55 = arith.constant 0.353553385 : f32
    %192 = vector.broadcast %cst_55 : f32 to vector<16x16xf32>
    %193 = arith.mulf %191, %192 : vector<16x16xf32>
    %194 = arith.addf %193, %15 : vector<16x16xf32>
    %cst_56 = arith.constant dense<0xFF800000> : vector<16xf32>
    %195 = vector.multi_reduction <maximumf>, %194, %cst_56 [1] : vector<16x16xf32> to vector<16xf32>
    %196 = vector.shape_cast %195 : vector<16xf32> to vector<16x1xf32>
    %197 = vector.broadcast %196 : vector<16x1xf32> to vector<16x16xf32>
    %198 = arith.subf %194, %197 : vector<16x16xf32>
    %199 = math.exp %198 : vector<16x16xf32>
    %cst_57 = arith.constant dense<0.000000e+00> : vector<16xf32>
    %200 = vector.multi_reduction <add>, %199, %cst_57 [1] : vector<16x16xf32> to vector<16xf32>
    %201 = vector.shape_cast %200 : vector<16xf32> to vector<16x1xf32>
    %202 = tpu.reciprocal %201 {approx = true} : vector<16x1xf32> -> vector<16x1xf32>
    %203 = vector.broadcast %202 : vector<16x1xf32> to vector<16x16xf32>
    %204 = arith.mulf %199, %203 : vector<16x16xf32>
    %205 = arith.truncf %204 : vector<16x16xf32> to vector<16x16xbf16>
    %cst_58 = arith.constant dense<0.000000e+00> : vector<16x8xf32>
    %206 = tpu.matmul %205, %190, %cst_58 {dimension_numbers = #tpu.dot_dimension_numbers<[1], [0], [0], [1], [0, 0, 1, 1], [], []>} : vector<16x16xbf16>, vector<16x8xbf16>, vector<16x8xf32> -> vector<16x8xf32>
    %207 = vector.extract_strided_slice %159 {offsets = [0, 16], sizes = [16, 8], strides = [1, 1]} : vector<16x32xf32> to vector<16x8xf32>
    %208 = arith.truncf %207 : vector<16x8xf32> to vector<16x8xbf16>
    %209 = vector.extract_strided_slice %160 {offsets = [0, 16], sizes = [16, 8], strides = [1, 1]} : vector<16x32xf32> to vector<16x8xf32>
    %210 = arith.truncf %209 : vector<16x8xf32> to vector<16x8xbf16>
    %211 = vector.extract_strided_slice %161 {offsets = [0, 16], sizes = [16, 8], strides = [1, 1]} : vector<16x32xf32> to vector<16x8xf32>
    %212 = arith.truncf %211 : vector<16x8xf32> to vector<16x8xbf16>
    %cst_59 = arith.constant dense<0.000000e+00> : vector<16x16xf32>
    %213 = tpu.matmul %208, %210, %cst_59 {dimension_numbers = #tpu.dot_dimension_numbers<[1], [1], [0], [0], [0, 0, 1, 0], [], []>} : vector<16x8xbf16>, vector<16x8xbf16>, vector<16x16xf32> -> vector<16x16xf32>
    %cst_60 = arith.constant 0.353553385 : f32
    %214 = vector.broadcast %cst_60 : f32 to vector<16x16xf32>
    %215 = arith.mulf %213, %214 : vector<16x16xf32>
    %216 = arith.addf %215, %15 : vector<16x16xf32>
    %cst_61 = arith.constant dense<0xFF800000> : vector<16xf32>
    %217 = vector.multi_reduction <maximumf>, %216, %cst_61 [1] : vector<16x16xf32> to vector<16xf32>
    %218 = vector.shape_cast %217 : vector<16xf32> to vector<16x1xf32>
    %219 = vector.broadcast %218 : vector<16x1xf32> to vector<16x16xf32>
    %220 = arith.subf %216, %219 : vector<16x16xf32>
    %221 = math.exp %220 : vector<16x16xf32>
    %cst_62 = arith.constant dense<0.000000e+00> : vector<16xf32>
    %222 = vector.multi_reduction <add>, %221, %cst_62 [1] : vector<16x16xf32> to vector<16xf32>
    %223 = vector.shape_cast %222 : vector<16xf32> to vector<16x1xf32>
    %224 = tpu.reciprocal %223 {approx = true} : vector<16x1xf32> -> vector<16x1xf32>
    %225 = vector.broadcast %224 : vector<16x1xf32> to vector<16x16xf32>
    %226 = arith.mulf %221, %225 : vector<16x16xf32>
    %227 = arith.truncf %226 : vector<16x16xf32> to vector<16x16xbf16>
    %cst_63 = arith.constant dense<0.000000e+00> : vector<16x8xf32>
    %228 = tpu.matmul %227, %212, %cst_63 {dimension_numbers = #tpu.dot_dimension_numbers<[1], [0], [0], [1], [0, 0, 1, 1], [], []>} : vector<16x16xbf16>, vector<16x8xbf16>, vector<16x8xf32> -> vector<16x8xf32>
    %229 = vector.extract_strided_slice %159 {offsets = [0, 24], sizes = [16, 8], strides = [1, 1]} : vector<16x32xf32> to vector<16x8xf32>
    %230 = arith.truncf %229 : vector<16x8xf32> to vector<16x8xbf16>
    %231 = vector.extract_strided_slice %160 {offsets = [0, 24], sizes = [16, 8], strides = [1, 1]} : vector<16x32xf32> to vector<16x8xf32>
    %232 = arith.truncf %231 : vector<16x8xf32> to vector<16x8xbf16>
    %233 = vector.extract_strided_slice %161 {offsets = [0, 24], sizes = [16, 8], strides = [1, 1]} : vector<16x32xf32> to vector<16x8xf32>
    %234 = arith.truncf %233 : vector<16x8xf32> to vector<16x8xbf16>
    %cst_64 = arith.constant dense<0.000000e+00> : vector<16x16xf32>
    %235 = tpu.matmul %230, %232, %cst_64 {dimension_numbers = #tpu.dot_dimension_numbers<[1], [1], [0], [0], [0, 0, 1, 0], [], []>} : vector<16x8xbf16>, vector<16x8xbf16>, vector<16x16xf32> -> vector<16x16xf32>
    %cst_65 = arith.constant 0.353553385 : f32
    %236 = vector.broadcast %cst_65 : f32 to vector<16x16xf32>
    %237 = arith.mulf %235, %236 : vector<16x16xf32>
    %238 = arith.addf %237, %15 : vector<16x16xf32>
    %cst_66 = arith.constant dense<0xFF800000> : vector<16xf32>
    %239 = vector.multi_reduction <maximumf>, %238, %cst_66 [1] : vector<16x16xf32> to vector<16xf32>
    %240 = vector.shape_cast %239 : vector<16xf32> to vector<16x1xf32>
    %241 = vector.broadcast %240 : vector<16x1xf32> to vector<16x16xf32>
    %242 = arith.subf %238, %241 : vector<16x16xf32>
    %243 = math.exp %242 : vector<16x16xf32>
    %cst_67 = arith.constant dense<0.000000e+00> : vector<16xf32>
    %244 = vector.multi_reduction <add>, %243, %cst_67 [1] : vector<16x16xf32> to vector<16xf32>
    %245 = vector.shape_cast %244 : vector<16xf32> to vector<16x1xf32>
    %246 = tpu.reciprocal %245 {approx = true} : vector<16x1xf32> -> vector<16x1xf32>
    %247 = vector.broadcast %246 : vector<16x1xf32> to vector<16x16xf32>
    %248 = arith.mulf %243, %247 : vector<16x16xf32>
    %249 = arith.truncf %248 : vector<16x16xf32> to vector<16x16xbf16>
    %cst_68 = arith.constant dense<0.000000e+00> : vector<16x8xf32>
    %250 = tpu.matmul %249, %234, %cst_68 {dimension_numbers = #tpu.dot_dimension_numbers<[1], [0], [0], [1], [0, 0, 1, 1], [], []>} : vector<16x16xbf16>, vector<16x8xbf16>, vector<16x8xf32> -> vector<16x8xf32>
    %251 = tpu.concatenate %184, %206, %228, %250 in 1 : vector<16x8xf32>, vector<16x8xf32>, vector<16x8xf32>, vector<16x8xf32> -> vector<16x32xf32>
    %252 = arith.truncf %251 : vector<16x32xf32> to vector<16x32xbf16>
    %cst_69 = arith.constant dense<0.000000e+00> : vector<16x32xf32>
    %253 = tpu.matmul %252, %162, %cst_69 {dimension_numbers = #tpu.dot_dimension_numbers<[1], [0], [0], [1], [0, 0, 1, 1], [], []>} : vector<16x32xbf16>, vector<32x32xbf16>, vector<16x32xf32> -> vector<16x32xf32>
    %254 = arith.addf %118, %253 : vector<16x32xf32>
    %cst_70 = arith.constant dense<0.000000e+00> : vector<16xf32>
    %255 = vector.multi_reduction <add>, %254, %cst_70 [1] : vector<16x32xf32> to vector<16xf32>
    %256 = vector.shape_cast %255 : vector<16xf32> to vector<16x1xf32>
    %cst_71 = arith.constant 3.200000e+01 : f32
    %257 = vector.broadcast %cst_71 : f32 to vector<16x1xf32>
    %258 = arith.divf %256, %257 : vector<16x1xf32>
    %259 = vector.broadcast %258 : vector<16x1xf32> to vector<16x32xf32>
    %260 = arith.subf %254, %259 : vector<16x32xf32>
    %261 = arith.mulf %260, %260 : vector<16x32xf32>
    %cst_72 = arith.constant dense<0.000000e+00> : vector<16xf32>
    %262 = vector.multi_reduction <add>, %261, %cst_72 [1] : vector<16x32xf32> to vector<16xf32>
    %263 = vector.shape_cast %262 : vector<16xf32> to vector<16x1xf32>
    %cst_73 = arith.constant 3.200000e+01 : f32
    %264 = vector.broadcast %cst_73 : f32 to vector<16x1xf32>
    %265 = arith.divf %263, %264 : vector<16x1xf32>
    %cst_74 = arith.constant 9.99999974E-6 : f32
    %266 = vector.broadcast %cst_74 : f32 to vector<16x1xf32>
    %267 = arith.addf %265, %266 : vector<16x1xf32>
    %268 = math.rsqrt %267 : vector<16x1xf32>
    %269 = vector.broadcast %268 : vector<16x1xf32> to vector<16x32xf32>
    %270 = arith.mulf %260, %269 : vector<16x32xf32>
    %271 = vector.broadcast %132 : vector<1x32xf32> to vector<16x32xf32>
    %272 = arith.mulf %270, %271 : vector<16x32xf32>
    %273 = vector.broadcast %133 : vector<1x32xf32> to vector<16x32xf32>
    %274 = arith.addf %272, %273 : vector<16x32xf32>
    %275 = arith.truncf %274 : vector<16x32xf32> to vector<16x32xbf16>
    %cst_75 = arith.constant dense<0.000000e+00> : vector<16x64xf32>
    %276 = tpu.matmul %275, %124, %cst_75 {dimension_numbers = #tpu.dot_dimension_numbers<[1], [0], [0], [1], [0, 0, 1, 1], [], []>} : vector<16x32xbf16>, vector<32x64xbf16>, vector<16x64xf32> -> vector<16x64xf32>
    %277 = vector.broadcast %134 : vector<1x64xf32> to vector<16x64xf32>
    %278 = arith.addf %276, %277 : vector<16x64xf32>
    %279 = arith.mulf %278, %278 : vector<16x64xf32>
    %280 = arith.mulf %278, %279 : vector<16x64xf32>
    %cst_76 = arith.constant 4.471500e-02 : f32
    %281 = vector.broadcast %cst_76 : f32 to vector<16x64xf32>
    %282 = arith.mulf %281, %280 : vector<16x64xf32>
    %283 = arith.addf %278, %282 : vector<16x64xf32>
    %cst_77 = arith.constant 0.797884583 : f32
    %284 = vector.broadcast %cst_77 : f32 to vector<16x64xf32>
    %285 = arith.mulf %284, %283 : vector<16x64xf32>
    %286 = math.tanh %285 : vector<16x64xf32>
    %cst_78 = arith.constant 1.000000e+00 : f32
    %287 = vector.broadcast %cst_78 : f32 to vector<16x64xf32>
    %288 = arith.addf %287, %286 : vector<16x64xf32>
    %cst_79 = arith.constant 5.000000e-01 : f32
    %289 = vector.broadcast %cst_79 : f32 to vector<16x64xf32>
    %290 = arith.mulf %289, %288 : vector<16x64xf32>
    %291 = arith.mulf %278, %290 : vector<16x64xf32>
    %292 = arith.truncf %291 : vector<16x64xf32> to vector<16x64xbf16>
    %cst_80 = arith.constant dense<0.000000e+00> : vector<16x32xf32>
    %293 = tpu.matmul %292, %127, %cst_80 {dimension_numbers = #tpu.dot_dimension_numbers<[1], [0], [0], [1], [0, 0, 1, 1], [], []>} : vector<16x64xbf16>, vector<64x32xbf16>, vector<16x32xf32> -> vector<16x32xf32>
    %294 = arith.addf %254, %293 : vector<16x32xf32>
    %295 = vector.broadcast %135 : vector<1x32xf32> to vector<16x32xf32>
    %296 = arith.addf %294, %295 : vector<16x32xf32>
    %297 = arith.addf %117, %1 : vector<16x32xf32>
    %c1 = arith.constant 1 : index
    %c0_81 = arith.constant 0 : index
    %c0_82 = arith.constant 0 : index
    %298 = vector.load %arg3[%c1, %c0_81, %c0_82] : memref<2x32x128xf32, #tpu.memory_space<vmem>>, vector<1x32x128xf32>
    %299 = vector.shape_cast %298 : vector<1x32x128xf32> to vector<32x128xf32>
    %300 = arith.truncf %299 : vector<32x128xf32> to vector<32x128xbf16>
    %c1_83 = arith.constant 1 : index
    %c0_84 = arith.constant 0 : index
    %c0_85 = arith.constant 0 : index
    %301 = vector.load %arg4[%c1_83, %c0_84, %c0_85] : memref<2x32x64xf32, #tpu.memory_space<vmem>>, vector<1x32x64xf32>
    %302 = vector.shape_cast %301 : vector<1x32x64xf32> to vector<32x64xf32>
    %303 = arith.truncf %302 : vector<32x64xf32> to vector<32x64xbf16>
    %c1_86 = arith.constant 1 : index
    %c0_87 = arith.constant 0 : index
    %c0_88 = arith.constant 0 : index
    %304 = vector.load %arg5[%c1_86, %c0_87, %c0_88] : memref<2x64x32xf32, #tpu.memory_space<vmem>>, vector<1x64x32xf32>
    %305 = vector.shape_cast %304 : vector<1x64x32xf32> to vector<64x32xf32>
    %306 = arith.truncf %305 : vector<64x32xf32> to vector<64x32xbf16>
    %c1_89 = arith.constant 1 : index
    %c0_90 = arith.constant 0 : index
    %c0_91 = arith.constant 0 : index
    %307 = vector.load %arg6[%c1_89, %c0_90, %c0_91] : memref<2x6x64xf32, #tpu.memory_space<vmem>>, vector<1x6x64xf32>
    %308 = vector.shape_cast %307 : vector<1x6x64xf32> to vector<6x64xf32>
    %309 = vector.extract_strided_slice %308 {offsets = [0, 0], sizes = [1, 32], strides = [1, 1]} : vector<6x64xf32> to vector<1x32xf32>
    %310 = vector.extract_strided_slice %308 {offsets = [1, 0], sizes = [1, 32], strides = [1, 1]} : vector<6x64xf32> to vector<1x32xf32>
    %311 = vector.extract_strided_slice %308 {offsets = [2, 0], sizes = [1, 32], strides = [1, 1]} : vector<6x64xf32> to vector<1x32xf32>
    %312 = vector.extract_strided_slice %308 {offsets = [3, 0], sizes = [1, 32], strides = [1, 1]} : vector<6x64xf32> to vector<1x32xf32>
    %313 = vector.extract_strided_slice %308 {offsets = [4, 0], sizes = [1, 64], strides = [1, 1]} : vector<6x64xf32> to vector<1x64xf32>
    %314 = vector.extract_strided_slice %308 {offsets = [5, 0], sizes = [1, 32], strides = [1, 1]} : vector<6x64xf32> to vector<1x32xf32>
    %cst_92 = arith.constant dense<0.000000e+00> : vector<16xf32>
    %315 = vector.multi_reduction <add>, %297, %cst_92 [1] : vector<16x32xf32> to vector<16xf32>
    %316 = vector.shape_cast %315 : vector<16xf32> to vector<16x1xf32>
    %cst_93 = arith.constant 3.200000e+01 : f32
    %317 = vector.broadcast %cst_93 : f32 to vector<16x1xf32>
    %318 = arith.divf %316, %317 : vector<16x1xf32>
    %319 = vector.broadcast %318 : vector<16x1xf32> to vector<16x32xf32>
    %320 = arith.subf %297, %319 : vector<16x32xf32>
    %321 = arith.mulf %320, %320 : vector<16x32xf32>
    %cst_94 = arith.constant dense<0.000000e+00> : vector<16xf32>
    %322 = vector.multi_reduction <add>, %321, %cst_94 [1] : vector<16x32xf32> to vector<16xf32>
    %323 = vector.shape_cast %322 : vector<16xf32> to vector<16x1xf32>
    %cst_95 = arith.constant 3.200000e+01 : f32
    %324 = vector.broadcast %cst_95 : f32 to vector<16x1xf32>
    %325 = arith.divf %323, %324 : vector<16x1xf32>
    %cst_96 = arith.constant 9.99999974E-6 : f32
    %326 = vector.broadcast %cst_96 : f32 to vector<16x1xf32>
    %327 = arith.addf %325, %326 : vector<16x1xf32>
    %328 = math.rsqrt %327 : vector<16x1xf32>
    %329 = vector.broadcast %328 : vector<16x1xf32> to vector<16x32xf32>
    %330 = arith.mulf %320, %329 : vector<16x32xf32>
    %331 = vector.broadcast %309 : vector<1x32xf32> to vector<16x32xf32>
    %332 = arith.mulf %330, %331 : vector<16x32xf32>
    %333 = vector.broadcast %310 : vector<1x32xf32> to vector<16x32xf32>
    %334 = arith.addf %332, %333 : vector<16x32xf32>
    %335 = arith.truncf %334 : vector<16x32xf32> to vector<16x32xbf16>
    %336 = vector.extract_strided_slice %300 {offsets = [0, 0], sizes = [32, 96], strides = [1, 1]} : vector<32x128xbf16> to vector<32x96xbf16>
    %cst_97 = arith.constant dense<0.000000e+00> : vector<16x96xf32>
    %337 = tpu.matmul %335, %336, %cst_97 {dimension_numbers = #tpu.dot_dimension_numbers<[1], [0], [0], [1], [0, 0, 1, 1], [], []>} : vector<16x32xbf16>, vector<32x96xbf16>, vector<16x96xf32> -> vector<16x96xf32>
    %338 = vector.extract_strided_slice %337 {offsets = [0, 0], sizes = [16, 32], strides = [1, 1]} : vector<16x96xf32> to vector<16x32xf32>
    %339 = vector.extract_strided_slice %337 {offsets = [0, 32], sizes = [16, 32], strides = [1, 1]} : vector<16x96xf32> to vector<16x32xf32>
    %340 = vector.extract_strided_slice %337 {offsets = [0, 64], sizes = [16, 32], strides = [1, 1]} : vector<16x96xf32> to vector<16x32xf32>
    %341 = vector.extract_strided_slice %300 {offsets = [0, 96], sizes = [32, 32], strides = [1, 1]} : vector<32x128xbf16> to vector<32x32xbf16>
    %342 = vector.extract_strided_slice %338 {offsets = [0, 0], sizes = [16, 8], strides = [1, 1]} : vector<16x32xf32> to vector<16x8xf32>
    %343 = arith.truncf %342 : vector<16x8xf32> to vector<16x8xbf16>
    %344 = vector.extract_strided_slice %339 {offsets = [0, 0], sizes = [16, 8], strides = [1, 1]} : vector<16x32xf32> to vector<16x8xf32>
    %345 = arith.truncf %344 : vector<16x8xf32> to vector<16x8xbf16>
    %346 = vector.extract_strided_slice %340 {offsets = [0, 0], sizes = [16, 8], strides = [1, 1]} : vector<16x32xf32> to vector<16x8xf32>
    %347 = arith.truncf %346 : vector<16x8xf32> to vector<16x8xbf16>
    %cst_98 = arith.constant dense<0.000000e+00> : vector<16x16xf32>
    %348 = tpu.matmul %343, %345, %cst_98 {dimension_numbers = #tpu.dot_dimension_numbers<[1], [1], [0], [0], [0, 0, 1, 0], [], []>} : vector<16x8xbf16>, vector<16x8xbf16>, vector<16x16xf32> -> vector<16x16xf32>
    %cst_99 = arith.constant 0.353553385 : f32
    %349 = vector.broadcast %cst_99 : f32 to vector<16x16xf32>
    %350 = arith.mulf %348, %349 : vector<16x16xf32>
    %351 = arith.addf %350, %15 : vector<16x16xf32>
    %cst_100 = arith.constant dense<0xFF800000> : vector<16xf32>
    %352 = vector.multi_reduction <maximumf>, %351, %cst_100 [1] : vector<16x16xf32> to vector<16xf32>
    %353 = vector.shape_cast %352 : vector<16xf32> to vector<16x1xf32>
    %354 = vector.broadcast %353 : vector<16x1xf32> to vector<16x16xf32>
    %355 = arith.subf %351, %354 : vector<16x16xf32>
    %356 = math.exp %355 : vector<16x16xf32>
    %cst_101 = arith.constant dense<0.000000e+00> : vector<16xf32>
    %357 = vector.multi_reduction <add>, %356, %cst_101 [1] : vector<16x16xf32> to vector<16xf32>
    %358 = vector.shape_cast %357 : vector<16xf32> to vector<16x1xf32>
    %359 = tpu.reciprocal %358 {approx = true} : vector<16x1xf32> -> vector<16x1xf32>
    %360 = vector.broadcast %359 : vector<16x1xf32> to vector<16x16xf32>
    %361 = arith.mulf %356, %360 : vector<16x16xf32>
    %362 = arith.truncf %361 : vector<16x16xf32> to vector<16x16xbf16>
    %cst_102 = arith.constant dense<0.000000e+00> : vector<16x8xf32>
    %363 = tpu.matmul %362, %347, %cst_102 {dimension_numbers = #tpu.dot_dimension_numbers<[1], [0], [0], [1], [0, 0, 1, 1], [], []>} : vector<16x16xbf16>, vector<16x8xbf16>, vector<16x8xf32> -> vector<16x8xf32>
    %364 = vector.extract_strided_slice %338 {offsets = [0, 8], sizes = [16, 8], strides = [1, 1]} : vector<16x32xf32> to vector<16x8xf32>
    %365 = arith.truncf %364 : vector<16x8xf32> to vector<16x8xbf16>
    %366 = vector.extract_strided_slice %339 {offsets = [0, 8], sizes = [16, 8], strides = [1, 1]} : vector<16x32xf32> to vector<16x8xf32>
    %367 = arith.truncf %366 : vector<16x8xf32> to vector<16x8xbf16>
    %368 = vector.extract_strided_slice %340 {offsets = [0, 8], sizes = [16, 8], strides = [1, 1]} : vector<16x32xf32> to vector<16x8xf32>
    %369 = arith.truncf %368 : vector<16x8xf32> to vector<16x8xbf16>
    %cst_103 = arith.constant dense<0.000000e+00> : vector<16x16xf32>
    %370 = tpu.matmul %365, %367, %cst_103 {dimension_numbers = #tpu.dot_dimension_numbers<[1], [1], [0], [0], [0, 0, 1, 0], [], []>} : vector<16x8xbf16>, vector<16x8xbf16>, vector<16x16xf32> -> vector<16x16xf32>
    %cst_104 = arith.constant 0.353553385 : f32
    %371 = vector.broadcast %cst_104 : f32 to vector<16x16xf32>
    %372 = arith.mulf %370, %371 : vector<16x16xf32>
    %373 = arith.addf %372, %15 : vector<16x16xf32>
    %cst_105 = arith.constant dense<0xFF800000> : vector<16xf32>
    %374 = vector.multi_reduction <maximumf>, %373, %cst_105 [1] : vector<16x16xf32> to vector<16xf32>
    %375 = vector.shape_cast %374 : vector<16xf32> to vector<16x1xf32>
    %376 = vector.broadcast %375 : vector<16x1xf32> to vector<16x16xf32>
    %377 = arith.subf %373, %376 : vector<16x16xf32>
    %378 = math.exp %377 : vector<16x16xf32>
    %cst_106 = arith.constant dense<0.000000e+00> : vector<16xf32>
    %379 = vector.multi_reduction <add>, %378, %cst_106 [1] : vector<16x16xf32> to vector<16xf32>
    %380 = vector.shape_cast %379 : vector<16xf32> to vector<16x1xf32>
    %381 = tpu.reciprocal %380 {approx = true} : vector<16x1xf32> -> vector<16x1xf32>
    %382 = vector.broadcast %381 : vector<16x1xf32> to vector<16x16xf32>
    %383 = arith.mulf %378, %382 : vector<16x16xf32>
    %384 = arith.truncf %383 : vector<16x16xf32> to vector<16x16xbf16>
    %cst_107 = arith.constant dense<0.000000e+00> : vector<16x8xf32>
    %385 = tpu.matmul %384, %369, %cst_107 {dimension_numbers = #tpu.dot_dimension_numbers<[1], [0], [0], [1], [0, 0, 1, 1], [], []>} : vector<16x16xbf16>, vector<16x8xbf16>, vector<16x8xf32> -> vector<16x8xf32>
    %386 = vector.extract_strided_slice %338 {offsets = [0, 16], sizes = [16, 8], strides = [1, 1]} : vector<16x32xf32> to vector<16x8xf32>
    %387 = arith.truncf %386 : vector<16x8xf32> to vector<16x8xbf16>
    %388 = vector.extract_strided_slice %339 {offsets = [0, 16], sizes = [16, 8], strides = [1, 1]} : vector<16x32xf32> to vector<16x8xf32>
    %389 = arith.truncf %388 : vector<16x8xf32> to vector<16x8xbf16>
    %390 = vector.extract_strided_slice %340 {offsets = [0, 16], sizes = [16, 8], strides = [1, 1]} : vector<16x32xf32> to vector<16x8xf32>
    %391 = arith.truncf %390 : vector<16x8xf32> to vector<16x8xbf16>
    %cst_108 = arith.constant dense<0.000000e+00> : vector<16x16xf32>
    %392 = tpu.matmul %387, %389, %cst_108 {dimension_numbers = #tpu.dot_dimension_numbers<[1], [1], [0], [0], [0, 0, 1, 0], [], []>} : vector<16x8xbf16>, vector<16x8xbf16>, vector<16x16xf32> -> vector<16x16xf32>
    %cst_109 = arith.constant 0.353553385 : f32
    %393 = vector.broadcast %cst_109 : f32 to vector<16x16xf32>
    %394 = arith.mulf %392, %393 : vector<16x16xf32>
    %395 = arith.addf %394, %15 : vector<16x16xf32>
    %cst_110 = arith.constant dense<0xFF800000> : vector<16xf32>
    %396 = vector.multi_reduction <maximumf>, %395, %cst_110 [1] : vector<16x16xf32> to vector<16xf32>
    %397 = vector.shape_cast %396 : vector<16xf32> to vector<16x1xf32>
    %398 = vector.broadcast %397 : vector<16x1xf32> to vector<16x16xf32>
    %399 = arith.subf %395, %398 : vector<16x16xf32>
    %400 = math.exp %399 : vector<16x16xf32>
    %cst_111 = arith.constant dense<0.000000e+00> : vector<16xf32>
    %401 = vector.multi_reduction <add>, %400, %cst_111 [1] : vector<16x16xf32> to vector<16xf32>
    %402 = vector.shape_cast %401 : vector<16xf32> to vector<16x1xf32>
    %403 = tpu.reciprocal %402 {approx = true} : vector<16x1xf32> -> vector<16x1xf32>
    %404 = vector.broadcast %403 : vector<16x1xf32> to vector<16x16xf32>
    %405 = arith.mulf %400, %404 : vector<16x16xf32>
    %406 = arith.truncf %405 : vector<16x16xf32> to vector<16x16xbf16>
    %cst_112 = arith.constant dense<0.000000e+00> : vector<16x8xf32>
    %407 = tpu.matmul %406, %391, %cst_112 {dimension_numbers = #tpu.dot_dimension_numbers<[1], [0], [0], [1], [0, 0, 1, 1], [], []>} : vector<16x16xbf16>, vector<16x8xbf16>, vector<16x8xf32> -> vector<16x8xf32>
    %408 = vector.extract_strided_slice %338 {offsets = [0, 24], sizes = [16, 8], strides = [1, 1]} : vector<16x32xf32> to vector<16x8xf32>
    %409 = arith.truncf %408 : vector<16x8xf32> to vector<16x8xbf16>
    %410 = vector.extract_strided_slice %339 {offsets = [0, 24], sizes = [16, 8], strides = [1, 1]} : vector<16x32xf32> to vector<16x8xf32>
    %411 = arith.truncf %410 : vector<16x8xf32> to vector<16x8xbf16>
    %412 = vector.extract_strided_slice %340 {offsets = [0, 24], sizes = [16, 8], strides = [1, 1]} : vector<16x32xf32> to vector<16x8xf32>
    %413 = arith.truncf %412 : vector<16x8xf32> to vector<16x8xbf16>
    %cst_113 = arith.constant dense<0.000000e+00> : vector<16x16xf32>
    %414 = tpu.matmul %409, %411, %cst_113 {dimension_numbers = #tpu.dot_dimension_numbers<[1], [1], [0], [0], [0, 0, 1, 0], [], []>} : vector<16x8xbf16>, vector<16x8xbf16>, vector<16x16xf32> -> vector<16x16xf32>
    %cst_114 = arith.constant 0.353553385 : f32
    %415 = vector.broadcast %cst_114 : f32 to vector<16x16xf32>
    %416 = arith.mulf %414, %415 : vector<16x16xf32>
    %417 = arith.addf %416, %15 : vector<16x16xf32>
    %cst_115 = arith.constant dense<0xFF800000> : vector<16xf32>
    %418 = vector.multi_reduction <maximumf>, %417, %cst_115 [1] : vector<16x16xf32> to vector<16xf32>
    %419 = vector.shape_cast %418 : vector<16xf32> to vector<16x1xf32>
    %420 = vector.broadcast %419 : vector<16x1xf32> to vector<16x16xf32>
    %421 = arith.subf %417, %420 : vector<16x16xf32>
    %422 = math.exp %421 : vector<16x16xf32>
    %cst_116 = arith.constant dense<0.000000e+00> : vector<16xf32>
    %423 = vector.multi_reduction <add>, %422, %cst_116 [1] : vector<16x16xf32> to vector<16xf32>
    %424 = vector.shape_cast %423 : vector<16xf32> to vector<16x1xf32>
    %425 = tpu.reciprocal %424 {approx = true} : vector<16x1xf32> -> vector<16x1xf32>
    %426 = vector.broadcast %425 : vector<16x1xf32> to vector<16x16xf32>
    %427 = arith.mulf %422, %426 : vector<16x16xf32>
    %428 = arith.truncf %427 : vector<16x16xf32> to vector<16x16xbf16>
    %cst_117 = arith.constant dense<0.000000e+00> : vector<16x8xf32>
    %429 = tpu.matmul %428, %413, %cst_117 {dimension_numbers = #tpu.dot_dimension_numbers<[1], [0], [0], [1], [0, 0, 1, 1], [], []>} : vector<16x16xbf16>, vector<16x8xbf16>, vector<16x8xf32> -> vector<16x8xf32>
    %430 = tpu.concatenate %363, %385, %407, %429 in 1 : vector<16x8xf32>, vector<16x8xf32>, vector<16x8xf32>, vector<16x8xf32> -> vector<16x32xf32>
    %431 = arith.truncf %430 : vector<16x32xf32> to vector<16x32xbf16>
    %cst_118 = arith.constant dense<0.000000e+00> : vector<16x32xf32>
    %432 = tpu.matmul %431, %341, %cst_118 {dimension_numbers = #tpu.dot_dimension_numbers<[1], [0], [0], [1], [0, 0, 1, 1], [], []>} : vector<16x32xbf16>, vector<32x32xbf16>, vector<16x32xf32> -> vector<16x32xf32>
    %433 = arith.addf %297, %432 : vector<16x32xf32>
    %cst_119 = arith.constant dense<0.000000e+00> : vector<16xf32>
    %434 = vector.multi_reduction <add>, %433, %cst_119 [1] : vector<16x32xf32> to vector<16xf32>
    %435 = vector.shape_cast %434 : vector<16xf32> to vector<16x1xf32>
    %cst_120 = arith.constant 3.200000e+01 : f32
    %436 = vector.broadcast %cst_120 : f32 to vector<16x1xf32>
    %437 = arith.divf %435, %436 : vector<16x1xf32>
    %438 = vector.broadcast %437 : vector<16x1xf32> to vector<16x32xf32>
    %439 = arith.subf %433, %438 : vector<16x32xf32>
    %440 = arith.mulf %439, %439 : vector<16x32xf32>
    %cst_121 = arith.constant dense<0.000000e+00> : vector<16xf32>
    %441 = vector.multi_reduction <add>, %440, %cst_121 [1] : vector<16x32xf32> to vector<16xf32>
    %442 = vector.shape_cast %441 : vector<16xf32> to vector<16x1xf32>
    %cst_122 = arith.constant 3.200000e+01 : f32
    %443 = vector.broadcast %cst_122 : f32 to vector<16x1xf32>
    %444 = arith.divf %442, %443 : vector<16x1xf32>
    %cst_123 = arith.constant 9.99999974E-6 : f32
    %445 = vector.broadcast %cst_123 : f32 to vector<16x1xf32>
    %446 = arith.addf %444, %445 : vector<16x1xf32>
    %447 = math.rsqrt %446 : vector<16x1xf32>
    %448 = vector.broadcast %447 : vector<16x1xf32> to vector<16x32xf32>
    %449 = arith.mulf %439, %448 : vector<16x32xf32>
    %450 = vector.broadcast %311 : vector<1x32xf32> to vector<16x32xf32>
    %451 = arith.mulf %449, %450 : vector<16x32xf32>
    %452 = vector.broadcast %312 : vector<1x32xf32> to vector<16x32xf32>
    %453 = arith.addf %451, %452 : vector<16x32xf32>
    %454 = arith.truncf %453 : vector<16x32xf32> to vector<16x32xbf16>
    %cst_124 = arith.constant dense<0.000000e+00> : vector<16x64xf32>
    %455 = tpu.matmul %454, %303, %cst_124 {dimension_numbers = #tpu.dot_dimension_numbers<[1], [0], [0], [1], [0, 0, 1, 1], [], []>} : vector<16x32xbf16>, vector<32x64xbf16>, vector<16x64xf32> -> vector<16x64xf32>
    %456 = vector.broadcast %313 : vector<1x64xf32> to vector<16x64xf32>
    %457 = arith.addf %455, %456 : vector<16x64xf32>
    %458 = arith.mulf %457, %457 : vector<16x64xf32>
    %459 = arith.mulf %457, %458 : vector<16x64xf32>
    %cst_125 = arith.constant 4.471500e-02 : f32
    %460 = vector.broadcast %cst_125 : f32 to vector<16x64xf32>
    %461 = arith.mulf %460, %459 : vector<16x64xf32>
    %462 = arith.addf %457, %461 : vector<16x64xf32>
    %cst_126 = arith.constant 0.797884583 : f32
    %463 = vector.broadcast %cst_126 : f32 to vector<16x64xf32>
    %464 = arith.mulf %463, %462 : vector<16x64xf32>
    %465 = math.tanh %464 : vector<16x64xf32>
    %cst_127 = arith.constant 1.000000e+00 : f32
    %466 = vector.broadcast %cst_127 : f32 to vector<16x64xf32>
    %467 = arith.addf %466, %465 : vector<16x64xf32>
    %cst_128 = arith.constant 5.000000e-01 : f32
    %468 = vector.broadcast %cst_128 : f32 to vector<16x64xf32>
    %469 = arith.mulf %468, %467 : vector<16x64xf32>
    %470 = arith.mulf %457, %469 : vector<16x64xf32>
    %471 = arith.truncf %470 : vector<16x64xf32> to vector<16x64xbf16>
    %cst_129 = arith.constant dense<0.000000e+00> : vector<16x32xf32>
    %472 = tpu.matmul %471, %306, %cst_129 {dimension_numbers = #tpu.dot_dimension_numbers<[1], [0], [0], [1], [0, 0, 1, 1], [], []>} : vector<16x64xbf16>, vector<64x32xbf16>, vector<16x32xf32> -> vector<16x32xf32>
    %473 = arith.addf %433, %472 : vector<16x32xf32>
    %474 = vector.broadcast %314 : vector<1x32xf32> to vector<16x32xf32>
    %475 = arith.addf %473, %474 : vector<16x32xf32>
    %476 = vector.extract_strided_slice %296 {offsets = [0, 0], sizes = [4, 32], strides = [1, 1]} : vector<16x32xf32> to vector<4x32xf32>
    %c0_130 = arith.constant 0 : index
    %c0_131 = arith.constant 0 : index
    %477 = vector.load %arg7[%c0_130, %c0_131] : memref<8x128xf32, #tpu.memory_space<vmem>>, vector<4x32xf32>
    tpu.vector_store %arg7[%c0_130, %c0_131], %476 {strides = array<i32>} : memref<8x128xf32, #tpu.memory_space<vmem>>, vector<4x32xf32>,
    %478 = vector.extract_strided_slice %475 {offsets = [0, 0], sizes = [4, 32], strides = [1, 1]} : vector<16x32xf32> to vector<4x32xf32>
    %c4 = arith.constant 4 : index
    %c0_132 = arith.constant 0 : index
    %479 = vector.load %arg7[%c4, %c0_132] : memref<8x128xf32, #tpu.memory_space<vmem>>, vector<4x32xf32>
    tpu.vector_store %arg7[%c4, %c0_132], %478 {strides = array<i32>} : memref<8x128xf32, #tpu.memory_space<vmem>>, vector<4x32xf32>,
    %480 = vector.extract_strided_slice %296 {offsets = [4, 0], sizes = [4, 32], strides = [1, 1]} : vector<16x32xf32> to vector<4x32xf32>
    %c0_133 = arith.constant 0 : index
    %c32 = arith.constant 32 : index
    %481 = vector.load %arg7[%c0_133, %c32] : memref<8x128xf32, #tpu.memory_space<vmem>>, vector<4x32xf32>
    tpu.vector_store %arg7[%c0_133, %c32], %480 {strides = array<i32>} : memref<8x128xf32, #tpu.memory_space<vmem>>, vector<4x32xf32>,
    %482 = vector.extract_strided_slice %475 {offsets = [4, 0], sizes = [4, 32], strides = [1, 1]} : vector<16x32xf32> to vector<4x32xf32>
    %c4_134 = arith.constant 4 : index
    %c32_135 = arith.constant 32 : index
    %483 = vector.load %arg7[%c4_134, %c32_135] : memref<8x128xf32, #tpu.memory_space<vmem>>, vector<4x32xf32>
    tpu.vector_store %arg7[%c4_134, %c32_135], %482 {strides = array<i32>} : memref<8x128xf32, #tpu.memory_space<vmem>>, vector<4x32xf32>,
    %484 = vector.extract_strided_slice %296 {offsets = [8, 0], sizes = [4, 32], strides = [1, 1]} : vector<16x32xf32> to vector<4x32xf32>
    %c0_136 = arith.constant 0 : index
    %c64 = arith.constant 64 : index
    %485 = vector.load %arg7[%c0_136, %c64] : memref<8x128xf32, #tpu.memory_space<vmem>>, vector<4x32xf32>
    tpu.vector_store %arg7[%c0_136, %c64], %484 {strides = array<i32>} : memref<8x128xf32, #tpu.memory_space<vmem>>, vector<4x32xf32>,
    %486 = vector.extract_strided_slice %475 {offsets = [8, 0], sizes = [4, 32], strides = [1, 1]} : vector<16x32xf32> to vector<4x32xf32>
    %c4_137 = arith.constant 4 : index
    %c64_138 = arith.constant 64 : index
    %487 = vector.load %arg7[%c4_137, %c64_138] : memref<8x128xf32, #tpu.memory_space<vmem>>, vector<4x32xf32>
    tpu.vector_store %arg7[%c4_137, %c64_138], %486 {strides = array<i32>} : memref<8x128xf32, #tpu.memory_space<vmem>>, vector<4x32xf32>,
    %488 = vector.extract_strided_slice %296 {offsets = [12, 0], sizes = [4, 32], strides = [1, 1]} : vector<16x32xf32> to vector<4x32xf32>
    %c0_139 = arith.constant 0 : index
    %c96 = arith.constant 96 : index
    %489 = vector.load %arg7[%c0_139, %c96] : memref<8x128xf32, #tpu.memory_space<vmem>>, vector<4x32xf32>
    tpu.vector_store %arg7[%c0_139, %c96], %488 {strides = array<i32>} : memref<8x128xf32, #tpu.memory_space<vmem>>, vector<4x32xf32>,
    %490 = vector.extract_strided_slice %475 {offsets = [12, 0], sizes = [4, 32], strides = [1, 1]} : vector<16x32xf32> to vector<4x32xf32>
    %c4_140 = arith.constant 4 : index
    %c96_141 = arith.constant 96 : index
    %491 = vector.load %arg7[%c4_140, %c96_141] : memref<8x128xf32, #tpu.memory_space<vmem>>, vector<4x32xf32>
    tpu.vector_store %arg7[%c4_140, %c96_141], %490 {strides = array<i32>} : memref<8x128xf32, #tpu.memory_space<vmem>>, vector<4x32xf32>,
    return
  }
}

</mosaic_0001>

<bundles_post_ra>
// kernel: transformer_block.1
= control target key start
LH: loop header
LB: loop body
LE: loop exit
PB: predicated region body
PF: predicated region fallthrough
CT: control target
= control target key end

     0   :  { %v3050_v3 = vmov 0.0   ;;  %vm3051_vm0 = vmmov 0   ;;  %s3052_s9 = smov 96   ;;  %vm56_vm1 = vcmask 261120   ;;  %vm156_vm2 = vcmask 64512   ;;  %s3053_s16 = smov 112   ;;  %s3784_s2 = inlined_call_operand.vmem [shape: f32[32,128], index: 2, kind: input, shape index: {}]   ;;  %s3785_s0 = inlined_call_operand.vmem [shape: f32[16,32], index: 0, kind: input, shape index: {}]   ;;  %s3786_s1 = inlined_call_operand.vmem [shape: f32[16,32], index: 1, kind: input, shape index: {}]   ;;  %s3787_s3 = inlined_call_operand.vmem [shape: f32[2,32,128], index: 3, kind: input, shape index: {}]   ;;  %s3788_s6 = inlined_call_operand.vmem [shape: f32[2,6,64], index: 6, kind: input, shape index: {}]   ;;  %s3789_s4 = inlined_call_operand.vmem [shape: f32[2,32,64], index: 4, kind: input, shape index: {}]   ;;  %s3790_s5 = inlined_call_operand.vmem [shape: f32[2,64,32], index: 5, kind: input, shape index: {}]   ;;  %s3791_s7 = inlined_call_operand.vmem [shape: f32[8,128], index: 7, kind: output, shape index: {}]  }
   0x1   :  { %v49_v0 = vld [vmem:[%s3784_s2] sm:$0xff]  ;;  %v50_v1 = vld [vmem:[%s3784_s2 + $0x8] sm:$0xff]  ;;  %v51_v2 = vld [vmem:[%s3784_s2 + $0x10] sm:$0xff]  ;;  %2633 = vmatprep.subr.bf16.mxu1 %v3050_v3  ;;  %2625 = vmatprep.subr.bf16.mxu0 %v3050_v3  ;;  %s3054_s17 = smov 120   ;;  %s3055_s18 = smov 104   ;;  %v31_v35 = vlaneseq  ;;  %vm208_vm5 = vcmask 130048  }
   0x2   :  { %v3119_v4 = vpack.c.bf16 %v50_v1, %v49_v0  ;;  %v52_v5 = vld [vmem:[%s3784_s2 + $0x18] sm:$0xff]  ;;  %2637 = vmatprep.mubr.msk.bf16.mxu1 %vm3051_vm0, %v3050_v3  ;;  %2629 = vmatprep.mubr.msk.bf16.mxu0 %vm3051_vm0, %v3050_v3  ;;  %v3136_v7 = vld [vmem:[%s3785_s0] sm:$0xff]  ;;  %v3141_v8 = vld [vmem:[%s3785_s0 + $0x8] sm:$0xff]  ;;  %v3056_v49 = vmov -1e+30   ;;  %s3057_s19 = smov 80  }
   0x3   :  { %v3130_v6 = vpack.c.bf16 %v52_v5, %v51_v2  ;;  %v55_v9 = vpack.c.bf16 %v3141_v8, %v3136_v7  ;;  %v29_v11 = vld [vmem:[%s3786_s1] sm:$0xff]  ;;  %v30_v12 = vld [vmem:[%s3786_s1 + $0x8] sm:$0xff]  ;;  %v3196_v36 = vshrl.u32 %v31_v35, 7  ;;  %v37_v37 = vand.u32 127, %v31_v35  ;;  %s3058_s20 = smov 72   ;;  %s3059_s21 = smov 88  }
   0x4   :  { %104 = vrot.lane.b32.xlu0 %v3119_v4, %s3052_s9  ;;  %2626 = vmatpush3.bf16.msra.mxu0 %v3119_v4  ;;  %v101_v14 = vpack.c.bf16 %v30_v12, %v29_v11  ;;  %s3060_s22 = smov 32   ;;  %s3061_s23 = smov 8   ;;  %vm684_vm6 = vcmask 195584   ;;  %vm1540_vm7 = vcmask 523264   ;;  %vm2450_vm8 = vcmask 257024  }
   0x5   :  { %2627 = vmatprep.subr.bf16.mxu0 %v3050_v3  ;;  %v33_v38 = vadd.s32 8, %v3196_v36  ;;  %v34_v39 = vcvt.s32.f32 %v3196_v36  ;;  %v38_v40 = vcvt.s32.f32 %v37_v37  ;;  %s3062_s24 = smov 16   ;;  %s3063_s25 = smov 24   ;;  %vm2457_vm9 = vcmask 523524  }
   0x6   :  { %s3064_s0 = smov 64   ;;  %s3065_s13 = smov 48   ;;  %vm2468_vm10 = vcmask 781824   ;;  %vm2478_vm11 = vcmask 1048324  }
   0x7   :  { %v35_v41 = vcvt.s32.f32 %v33_v38  ;;  %v39_v42 = vmul.f32 0.125, %v34_v39  ;;  %v43_v43 = vmul.f32 0.125, %v38_v40  ;;  %s3066_s14 = smov 40   ;;  %s3067_s15 = smov 56  }
   0x8   :  { %106 = vrot.lane.b32.xlu0 %v3130_v6, %s3052_s9  ;;  %2628 = vmatpush3.bf16.msra.mxu0 %v3130_v6 }
   0x9   :  { %2641 = vmatprep.subr.bf16.mxu0 %v3050_v3  ;;  %v40_v44 = vmul.f32 0.125, %v35_v41  ;;  %v41_v45 = vfloor.f32 %v39_v42  ;;  %v44_v46 = vfloor.f32 %v43_v43 }
   0xb   :  { %2630 = vmatmul.mubr.msk.bf16.vlgmr.msra.gmra.mrb[0].mxu0 %vm56_vm1, %v55_v9  ;;  %v42_v47 = vfloor.f32 %v40_v44  ;;  %vm45_vm3 = vcmp.eq.f32.partialorder %v41_v45, %v44_v46 }
   0xc   :  { %2643 = vmatprep.mubr.msk.bf16.mxu0 %vm3051_vm0, %v3050_v3  ;;  %v3200_v50 = vsel %vm45_vm3, 0.0, %v3056_v49 }
   0xd   :  { %vm46_vm4 = vcmp.eq.f32.partialorder %v42_v47, %v44_v46 }
   0xe   :  { %v3202_v54 = vsel %vm46_vm4, 0.0, %v3056_v49 }
  0x76   :  { %v105_v10 = vpop.permute.xlu0 %104 }
  0x77   :  { %2634 = vmatpush3.bf16.msra.mxu1 %v105_v10 }
  0x78   :  { %2635 = vmatprep.subr.bf16.mxu1 %v3050_v3 }
  0x7a   :  { %v107_v13 = vpop.permute.xlu0 %106 }
  0x7b   :  { %2636 = vmatpush3.bf16.msra.mxu1 %v107_v13 }
  0x7c   :  { %2647 = vmatprep.subr.bf16.mxu1 %v3050_v3 }
  0x7e   :  { %2638 = vmatmul.mubr.msk.bf16.vlgmr.msra.gmra.mrb[0].mxu1 %vm56_vm1, %v101_v14 }
  0x7f   :  { %2649 = vmatprep.mubr.msk.bf16.mxu1 %vm3051_vm0, %v3050_v3 }
  0xde   :  { %v94_v15 = vpop.f32.mrb[0].mxu0 }
  0xdf   :  { %v2631_v16 = vpop.f32.mrb[1].mxu0 }
  0xe0   :  { %v97_v17 = vpop.f32.mrb[2].mxu0 }
  0xe1   :  { %v154_v18 = vpack.c.bf16 %v97_v17, %v94_v15  ;;  %v2632_v19 = vpop.f32.mrb[3].mxu0 }
 0x151   :  { %v147_v20 = vpop.f32.mrb[0].mxu1 }
 0x152   :  { %v2639_v21 = vpop.f32.mrb[1].mxu1 }
 0x153   :  { %v150_v22 = vpop.f32.mrb[2].mxu1 }
 0x154   :  { %v3164_v23 = vpack.c.bf16 %v150_v22, %v147_v20  ;;  %v2640_v24 = vpop.f32.mrb[3].mxu1 }
 0x156   :  { %408 = vrot.lane.b32.xlu0 %v3164_v23, %s3053_s16  ;;  %283 = vrot.lane.b32.xlu1 %v3164_v23, %s3054_s17  ;;  %v161_v25 = vsel %vm156_vm2, %v3164_v23, 0 }
 0x157   :  { %2642 = vmatpush3.bf16.xpose.msra.mxu0 %v161_v25 }
 0x158   :  { %2653 = vmatprep.subr.bf16.mxu0 %v3050_v3 }
 0x15a   :  { %533 = vrot.lane.b32.xlu0 %v3164_v23, %s3055_s18  ;;  %281 = vrot.lane.b32.xlu1 %v154_v18, %s3054_s17 }
 0x15e   :  { %406 = vrot.lane.b32.xlu1 %v154_v18, %s3053_s16  ;;  %2644 = vmatmul.mubr.msk.bf16.vlgmr.msra.gmra.mrb[4].mxu0 %vm156_vm2, %v154_v18 }
 0x15f   :  { %2655 = vmatprep.mubr.msk.bf16.mxu0 %vm3051_vm0, %v3050_v3 }
 0x162   :  { %531 = vrot.lane.b32.xlu1 %v154_v18, %s3055_s18 }
 0x1c8   :  { %v284_v26 = vpop.permute.xlu1 %283  ;;  %v409_v28 = vpop.permute.xlu0 %408 }
 0x1c9   :  { %v289_v27 = vsel %vm156_vm2, %v284_v26, 0  ;;  %v414_v30 = vsel %vm156_vm2, %v409_v28, 0 }
 0x1ca   :  { %2654 = vmatpush3.bf16.xpose.msra.mxu0 %v289_v27 }
 0x1cb   :  { %2665 = vmatprep.subr.bf16.mxu0 %v3050_v3 }
 0x1cc   :  { %v282_v29 = vpop.permute.xlu1 %281  ;;  %v534_v31 = vpop.permute.xlu0 %533 }
 0x1cd   :  { %v539_v33 = vsel %vm156_vm2, %v534_v31, 0 }
 0x1d0   :  { %v407_v32 = vpop.permute.xlu1 %406 }
 0x1d1   :  { %2656 = vmatmul.mubr.msk.bf16.vlgmr.msra.gmra.mrb[8].mxu0 %vm156_vm2, %v282_v29 }
 0x1d2   :  { %2666 = vmatpush3.bf16.xpose.msra.mxu0 %v414_v30  ;;  %2667 = vmatprep.mubr.msk.bf16.mxu0 %vm3051_vm0, %v3050_v3 }
 0x1d3   :  { %2677 = vmatprep.subr.bf16.mxu0 %v3050_v3 }
 0x1d4   :  { %v532_v34 = vpop.permute.xlu1 %531 }
 0x1d9   :  { %2668 = vmatmul.mubr.msk.bf16.vlgmr.msra.gmra.mrb[12].mxu0 %vm156_vm2, %v407_v32 }
 0x1da   :  { %2678 = vmatpush3.bf16.xpose.msra.mxu0 %v539_v33  ;;  %2679 = vmatprep.mubr.msk.bf16.mxu0 %vm3051_vm0, %v3050_v3 }
 0x1db   :  { %2689 = vmatprep.subr.bf16.mxu0 %v3050_v3 }
 0x1e1   :  { %2680 = vmatmul.mubr.msk.bf16.vlgmr.msra.gmra.mrb[16].mxu0 %vm156_vm2, %v532_v34 }
 0x1e2   :  { %2693 = vmatprep.mubr.msk.bf16.mxu0 %vm3051_vm0, %v3050_v3 }
 0x231   :  { %v197_v48 = vpop.f32.mrb[4].mxu0 }
 0x232   :  { %v204_v51 = vmul.f32 0.35355338, %v197_v48  ;;  %v2645_v52 = vpop.f32.mrb[5].mxu0 }
 0x233   :  { %v200_v53 = vpop.f32.mrb[6].mxu0 }
 0x234   :  { %v205_v55 = vmul.f32 0.35355338, %v200_v53  ;;  %v2646_v56 = vpop.f32.mrb[7].mxu0  ;;  %v206_v57 = vadd.f32 %v204_v51, %v3200_v50 }
 0x236   :  { %v209_v58 = vsel %vm208_vm5, %v206_v57, -inf  ;;  %v207_v59 = vadd.f32 %v205_v55, %v3202_v54 }
 0x237   :  { %210 = vmax.xlane.f32.xlu0 %v209_v58 }
 0x238   :  { %v212_v60 = vsel %vm208_vm5, %v207_v59, -inf }
 0x239   :  { %213 = vmax.xlane.f32.xlu1 %v212_v60 }
 0x2a4   :  { %v325_v61 = vpop.f32.mrb[8].mxu0 }
 0x2a5   :  { %v332_v62 = vmul.f32 0.35355338, %v325_v61  ;;  %v2657_v63 = vpop.f32.mrb[9].mxu0 }
 0x2a6   :  { %v328_v0 = vpop.f32.mrb[10].mxu0 }
 0x2a7   :  { %v333_v1 = vmul.f32 0.35355338, %v328_v0  ;;  %v2658_v2 = vpop.f32.mrb[11].mxu0  ;;  %v334_v5 = vadd.f32 %v332_v62, %v3200_v50 }
 0x2a9   :  { %v336_v9 = vsel %vm208_vm5, %v334_v5, -inf  ;;  %v335_v10 = vadd.f32 %v333_v1, %v3202_v54 }
 0x2aa   :  { %337 = vmax.xlane.f32.xlu0 %v336_v9 }
 0x2ab   :  { %v339_v14 = vsel %vm208_vm5, %v335_v10, -inf }
 0x2ac   :  { %v450_v11 = vpop.f32.mrb[12].mxu0 }
 0x2ad   :  { %v457_v12 = vmul.f32 0.35355338, %v450_v11  ;;  %v2669_v13 = vpop.f32.mrb[13].mxu0 }
 0x2ae   :  { %340 = vmax.xlane.f32.xlu0 %v339_v14  ;;  %v453_v15 = vpop.f32.mrb[14].mxu0 }
 0x2af   :  { %v458_v16 = vmul.f32 0.35355338, %v453_v15  ;;  %v2670_v17 = vpop.f32.mrb[15].mxu0  ;;  %v459_v18 = vadd.f32 %v457_v12, %v3200_v50 }
 0x2b1   :  { %v461_v19 = vsel %vm208_vm5, %v459_v18, -inf  ;;  %v460_v20 = vadd.f32 %v458_v16, %v3202_v54 }
 0x2b2   :  { %462 = vmax.xlane.f32.xlu1 %v461_v19 }
 0x2b3   :  { %v464_v21 = vsel %vm208_vm5, %v460_v20, -inf }
 0x2b4   :  { %465 = vmax.xlane.f32.xlu0 %v464_v21  ;;  %v575_v22 = vpop.f32.mrb[16].mxu0 }
 0x2b5   :  { %v582_v24 = vmul.f32 0.35355338, %v575_v22  ;;  %v2681_v25 = vpop.f32.mrb[17].mxu0 }
 0x2b6   :  { %v578_v26 = vpop.f32.mrb[18].mxu0 }
 0x2b7   :  { %v583_v27 = vmul.f32 0.35355338, %v578_v26  ;;  %v2682_v28 = vpop.f32.mrb[19].mxu0  ;;  %v584_v29 = vadd.f32 %v582_v24, %v3200_v50 }
 0x2b9   :  { %v586_v30 = vsel %vm208_vm5, %v584_v29, -inf  ;;  %v585_v31 = vadd.f32 %v583_v27, %v3202_v54 }
 0x2ba   :  { %587 = vmax.xlane.f32.xlu1 %v586_v30 }
 0x2bb   :  { %v589_v32 = vsel %vm208_vm5, %v585_v31, -inf }
 0x2bc   :  { %590 = vmax.xlane.f32.xlu0 %v589_v32 }
 0x2c4   :  { %v211_v38 = vpop.xlane.xlu0 %210 }
 0x2c5   :  { %v215_v40 = vsub.f32 %v206_v57, %v211_v38 }
 0x2c6   :  { %v214_v33 = vpop.xlane.xlu1 %213 }
 0x2c7   :  { %v216_v34 = vsub.f32 %v207_v59, %v214_v33  ;;  %v217_v41 = vmul.f32 1.442695, %v215_v40 }
 0x2c9   :  { %v219_v35 = vmul.f32 1.442695, %v216_v34 }
 0x2cb   :  { %2928 = vpow2.f32 %v219_v35  ;;  %233 = vrot.lane.b32.xlu1 %v3164_v23, %s3052_s9 }
 0x2cc   :  { %2930 = vpow2.f32 %v217_v41 }
 0x2d5   :  { %v3222_v37 = vpop.eup %2928 }
 0x2d6   :  { %v224_v39 = vsel %vm208_vm5, %v3222_v37, 0.0  ;;  %v2931_v42 = vpop.eup %2930 }
 0x2d7   :  { %225 = vadd.xlane.f32.xlu0 %v224_v39  ;;  %v221_v43 = vsel %vm208_vm5, %v2931_v42, 0.0 }
 0x2ef   :  { %222 = vadd.xlane.f32.xlu1 %v221_v43 }
 0x337   :  { %v338_v44 = vpop.xlane.xlu0 %337 }
 0x338   :  { %v342_v45 = vsub.f32 %v334_v5, %v338_v44 }
 0x33a   :  { %v344_v46 = vmul.f32 1.442695, %v342_v45 }
 0x33b   :  { %v341_v47 = vpop.xlane.xlu0 %340 }
 0x33c   :  { %2932 = vpow2.f32 %v344_v46  ;;  %v343_v48 = vsub.f32 %v335_v10, %v341_v47 }
 0x33e   :  { %v346_v49 = vmul.f32 1.442695, %v343_v48 }
 0x33f   :  { %v463_v51 = vpop.xlane.xlu1 %462 }
 0x340   :  { %2934 = vpow2.f32 %v346_v49  ;;  %v467_v52 = vsub.f32 %v459_v18, %v463_v51 }
 0x341   :  { %v466_v53 = vpop.xlane.xlu0 %465 }
 0x342   :  { %v469_v55 = vmul.f32 1.442695, %v467_v52  ;;  %v468_v56 = vsub.f32 %v460_v20, %v466_v53 }
 0x344   :  { %2936 = vpow2.f32 %v469_v55  ;;  %v471_v57 = vmul.f32 1.442695, %v468_v56 }
 0x346   :  { %v2933_v58 = vpop.eup %2932  ;;  %2938 = vpow2.f32 %v471_v57 }
 0x347   :  { %v588_v59 = vpop.xlane.xlu1 %587  ;;  %v348_v60 = vsel %vm208_vm5, %v2933_v58, 0.0 }
 0x348   :  { %v592_v61 = vsub.f32 %v584_v29, %v588_v59  ;;  %349 = vadd.xlane.f32.xlu1 %v348_v60 }
 0x349   :  { %v591_v62 = vpop.xlane.xlu0 %590 }
 0x34a   :  { %v2935_v63 = vpop.eup %2934  ;;  %v594_v0 = vmul.f32 1.442695, %v592_v61  ;;  %v593_v1 = vsub.f32 %v585_v31, %v591_v62 }
 0x34b   :  { %v234_v2 = vpop.permute.xlu1 %233  ;;  %v351_v5 = vsel %vm208_vm5, %v2935_v63, 0.0 }
 0x34c   :  { %2940 = vpow2.f32 %v594_v0  ;;  %v596_v9 = vmul.f32 1.442695, %v593_v1  ;;  %2648 = vmatpush3.bf16.msra.mxu1 %v234_v2  ;;  %352 = vadd.xlane.f32.xlu0 %v351_v5 }
 0x34d   :  { %2659 = vmatprep.subr.bf16.mxu1 %v3050_v3 }
 0x34e   :  { %v2937_v10 = vpop.eup %2936  ;;  %2942 = vpow2.f32 %v596_v9 }
 0x34f   :  { %v473_v11 = vsel %vm208_vm5, %v2937_v10, 0.0 }
 0x350   :  { %v2939_v12 = vpop.eup %2938  ;;  %474 = vadd.xlane.f32.xlu1 %v473_v11 }
 0x351   :  { %v476_v13 = vsel %vm208_vm5, %v2939_v12, 0.0 }
 0x352   :  { %477 = vadd.xlane.f32.xlu0 %v476_v13 }
 0x356   :  { %v2941_v14 = vpop.eup %2940 }
 0x357   :  { %v598_v15 = vsel %vm208_vm5, %v2941_v14, 0.0 }
 0x358   :  { %v2943_v16 = vpop.eup %2942  ;;  %599 = vadd.xlane.f32.xlu1 %v598_v15 }
 0x359   :  { %v601_v17 = vsel %vm208_vm5, %v2943_v16, 0.0 }
 0x35a   :  { %602 = vadd.xlane.f32.xlu0 %v601_v17 }
 0x364   :  { %v226_v18 = vpop.xlane.xlu0 %225 }
 0x365   :  { %2944 = vrcp.f32 %v226_v18 }
 0x369   :  { %484 = vrot.lane.b32.xlu1 %v3164_v23, %s3057_s19 }
 0x36d   :  { %609 = vrot.lane.b32.xlu1 %v3164_v23, %s3058_s20 }
 0x36f   :  { %v2945_v20 = vpop.eup %2944 }
 0x370   :  { %359 = vrot.lane.b32.xlu0 %v3164_v23, %s3059_s21  ;;  %v230_v22 = vmul.f32 %v2945_v20, %v3222_v37 }
 0x374   :  { %688 = vrot.lane.b32.xlu0 %v3119_v4, %s3060_s22 }
 0x37c   :  { %v223_v19 = vpop.xlane.xlu1 %222 }
 0x37d   :  { %2946 = vrcp.f32 %v223_v19 }
 0x387   :  { %v2947_v21 = vpop.eup %2946 }
 0x388   :  { %v229_v24 = vmul.f32 %v2947_v21, %v2931_v42 }
 0x38a   :  { %v231_v25 = vpack.c.bf16 %v230_v22, %v229_v24 }
 0x38c   :  { %2650 = vmatmul.mubr.msk.bf16.vlgmr.msra.gmra.mrb[4].mxu1 %vm208_vm5, %v231_v25 }
 0x38d   :  { %2661 = vmatprep.mubr.msk.bf16.mxu1 %vm3051_vm0, %v3050_v3 }
 0x3d5   :  { %v350_v27 = vpop.xlane.xlu1 %349 }
 0x3d9   :  { %v353_v26 = vpop.xlane.xlu0 %352 }
 0x3da   :  { %2948 = vrcp.f32 %v353_v26 }
 0x3db   :  { %2950 = vrcp.f32 %v350_v27 }
 0x3dd   :  { %v475_v28 = vpop.xlane.xlu1 %474 }
 0x3df   :  { %v478_v23 = vpop.xlane.xlu0 %477 }
 0x3e0   :  { %2952 = vrcp.f32 %v478_v23 }
 0x3e1   :  { %2954 = vrcp.f32 %v475_v28 }
 0x3e4   :  { %v2949_v29 = vpop.eup %2948 }
 0x3e5   :  { %v2951_v31 = vpop.eup %2950  ;;  %v357_v32 = vmul.f32 %v2949_v29, %v2935_v63  ;;  %v600_v33 = vpop.xlane.xlu1 %599 }
 0x3e6   :  { %v356_v34 = vmul.f32 %v2951_v31, %v2933_v58 }
 0x3e7   :  { %v603_v30 = vpop.xlane.xlu0 %602 }
 0x3e8   :  { %2956 = vrcp.f32 %v603_v30  ;;  %v358_v37 = vpack.c.bf16 %v357_v32, %v356_v34 }
 0x3e9   :  { %2958 = vrcp.f32 %v600_v33  ;;  %v485_v39 = vpop.permute.xlu1 %484 }
 0x3ea   :  { %v2953_v38 = vpop.eup %2952 }
 0x3eb   :  { %v360_v35 = vpop.permute.xlu0 %359  ;;  %v2955_v40 = vpop.eup %2954  ;;  %v482_v41 = vmul.f32 %v2953_v38, %v2939_v12 }
 0x3ec   :  { %2660 = vmatpush3.bf16.msra.mxu1 %v360_v35  ;;  %v481_v42 = vmul.f32 %v2955_v40, %v2937_v10 }
 0x3ed   :  { %2671 = vmatprep.subr.bf16.mxu1 %v3050_v3  ;;  %v610_v45 = vpop.permute.xlu1 %609 }
 0x3ee   :  { %v483_v43 = vpack.c.bf16 %v482_v41, %v481_v42 }
 0x3ef   :  { %2662 = vmatmul.mubr.msk.bf16.vlgmr.msra.gmra.mrb[8].mxu1 %vm208_vm5, %v358_v37  ;;  %v689_v56 = vpop.permute.xlu0 %688 }
 0x3f0   :  { %2672 = vmatpush3.bf16.msra.mxu1 %v485_v39  ;;  %2673 = vmatprep.mubr.msk.bf16.mxu1 %vm3051_vm0, %v3050_v3 }
 0x3f1   :  { %2683 = vmatprep.subr.bf16.mxu1 %v3050_v3  ;;  %2690 = vmatpush3.bf16.msra.mxu0 %v689_v56 }
 0x3f2   :  { %v2957_v44 = vpop.eup %2956  ;;  %2691 = vmatprep.subr.bf16.mxu0 %v3050_v3 }
 0x3f3   :  { %v2959_v46 = vpop.eup %2958  ;;  %v607_v47 = vmul.f32 %v2957_v44, %v2943_v16 }
 0x3f4   :  { %v606_v48 = vmul.f32 %v2959_v46, %v2941_v14  ;;  %v741_v46 = vld [vmem:[%s3787_s3 + $0x8] sm:$0xff] }
 0x3f6   :  { %v608_v49 = vpack.c.bf16 %v607_v47, %v606_v48  ;;  %v742_v48 = vld [vmem:[%s3787_s3 + $0x10] sm:$0xff] }
 0x3f7   :  { %2674 = vmatmul.mubr.msk.bf16.vlgmr.msra.gmra.mrb[12].mxu1 %vm208_vm5, %v483_v43 }
 0x3f8   :  { %2684 = vmatpush3.bf16.msra.mxu1 %v610_v45  ;;  %2685 = vmatprep.mubr.msk.bf16.mxu1 %vm3051_vm0, %v3050_v3  ;;  %v740_v45 = vld [vmem:[%s3787_s3] sm:$0xff] }
 0x3f9   :  { %2697 = vmatprep.subr.bf16.mxu1 %v3050_v3  ;;  %v3300_v47 = vpack.c.bf16 %v741_v46, %v740_v45 }
 0x3ff   :  { %2686 = vmatmul.mubr.msk.bf16.vlgmr.msra.gmra.mrb[16].mxu1 %vm208_vm5, %v608_v49  ;;  %v743_v49 = vld [vmem:[%s3787_s3 + $0x18] sm:$0xff] }
 0x400   :  { %2701 = vmatprep.mubr.msk.bf16.mxu1 %vm3051_vm0, %v3050_v3  ;;  %2698 = vmatpush3.bf16.msra.mxu1 %v3300_v47 }
 0x401   :  { %2699 = vmatprep.subr.bf16.mxu1 %v3050_v3 }
 0x45f   :  { %v273_v51 = vpop.f32.mrb[4].mxu1 }
 0x460   :  { %v2651_v52 = vpop.f32.mrb[5].mxu1 }
 0x461   :  { %v276_v53 = vpop.f32.mrb[6].mxu1 }
 0x462   :  { %v2652_v55 = vpop.f32.mrb[7].mxu1 }
 0x4c2   :  { %v399_v57 = vpop.f32.mrb[8].mxu1 }
 0x4c3   :  { %v2663_v58 = vpop.f32.mrb[9].mxu1 }
 0x4c4   :  { %v402_v59 = vpop.f32.mrb[10].mxu1 }
 0x4c5   :  { %v2883_v60 = vpack.i.bf16 %v402_v59, %v399_v57  ;;  %v2664_v61 = vpop.f32.mrb[11].mxu1  ;;  %v794_v59 = vsub.s32 0, %v3196_v36 }
 0x4c7   :  { %2884 = vrot.lane.b32.xlu1 %v2883_v60, %s3061_s23  ;;  %v3318_v60 = vld [vmem:[%s3788_s6] sm:$0x3f] }
 0x4c8   :  { %v795_v61 = vrot.slane %v3318_v60, %v794_v59 }
 0x4ca   :  { %v524_v62 = vpop.f32.mrb[12].mxu1 }
 0x4cb   :  { %v2675_v63 = vpop.f32.mrb[13].mxu1 }
 0x4cc   :  { %v527_v0 = vpop.f32.mrb[14].mxu1 }
 0x4cd   :  { %v2888_v4 = vpack.i.bf16 %v527_v0, %v524_v62  ;;  %v2676_v1 = vpop.f32.mrb[15].mxu1  ;;  %v800_v62 = vsub.s32 1, %v3196_v36 }
 0x4cf   :  { %2889 = vrot.lane.b32.xlu0 %v2888_v4, %s3062_s24 }
 0x4d2   :  { %v649_v2 = vpop.f32.mrb[16].mxu1 }
 0x4d3   :  { %v2687_v5 = vpop.f32.mrb[17].mxu1  ;;  %690 = vrot.lane.b32.xlu0 %v3130_v6, %s3060_s22 }
 0x4d4   :  { %v652_v9 = vpop.f32.mrb[18].mxu1  ;;  %v801_v5 = vrot.slane %v3318_v60, %v800_v62 }
 0x4d5   :  { %v2893_v10 = vpack.i.bf16 %v652_v9, %v649_v2  ;;  %v2688_v11 = vpop.f32.mrb[19].mxu1 }
 0x4d7   :  { %2894 = vrot.lane.b32.xlu1 %v2893_v10, %s3063_s25 }
 0x539   :  { %v2885_v13 = vpop.permute.xlu1 %2884 }
 0x53a   :  { %v2887_v15 = vunpack.i.h.bf16 %v2885_v13  ;;  %v2886_v16 = vunpack.i.l.bf16 %v2885_v13 }
 0x53c   :  { %v681_v6 = vsel %vm156_vm2, %v276_v53, %v2887_v15  ;;  %v680_v20 = vsel %vm156_vm2, %v273_v51, %v2886_v16  ;;  %v3310_v51 = vpack.c.bf16 %v743_v49, %v742_v48 }
 0x53e   :  { %2700 = vmatpush3.bf16.msra.mxu1 %v3310_v51 }
 0x53f   :  { %2711 = vmatprep.subr.bf16.mxu1 %v3050_v3 }
 0x541   :  { %v2890_v12 = vpop.permute.xlu0 %2889 }
 0x542   :  { %v2892_v17 = vunpack.i.h.bf16 %v2890_v12  ;;  %v2891_v18 = vunpack.i.l.bf16 %v2890_v12 }
 0x544   :  { %v683_v24 = vsel %vm208_vm5, %v681_v6, %v2892_v17  ;;  %v682_v25 = vsel %vm208_vm5, %v680_v20, %v2891_v18 }
 0x545   :  { %v691_v14 = vpop.permute.xlu0 %690 }
 0x546   :  { %2692 = vmatpush3.bf16.msra.mxu0 %v691_v14 }
 0x547   :  { %2705 = vmatprep.subr.bf16.mxu0 %v3050_v3 }
 0x549   :  { %v2895_v19 = vpop.permute.xlu1 %2894 }
 0x54a   :  { %v2897_v21 = vunpack.i.h.bf16 %v2895_v19  ;;  %v2896_v22 = vunpack.i.l.bf16 %v2895_v19 }
 0x54c   :  { %v685_v26 = vsel %vm684_vm6, %v682_v25, %v2896_v22  ;;  %v686_v27 = vsel %vm684_vm6, %v683_v24, %v2897_v21 }
 0x54d   :  { %v687_v23 = vpack.c.bf16 %v686_v27, %v685_v26 }
 0x54f   :  { %2694 = vmatmul.mubr.msk.bf16.vlgmr.msra.gmra.mrb[20].mxu0 %vm56_vm1, %v687_v23 }
 0x550   :  { %2707 = vmatprep.mubr.msk.bf16.mxu0 %vm3051_vm0, %v3050_v3 }
 0x622   :  { %v3274_v28 = vpop.f32.mrb[20].mxu0 }
 0x623   :  { %v3278_v29 = vadd.f32 %v3274_v28, %v3136_v7  ;;  %v2695_v30 = vpop.f32.mrb[21].mxu0 }
 0x624   :  { %v3280_v31 = vpop.f32.mrb[22].mxu0 }
 0x625   :  { %v3284_v32 = vadd.f32 %v3280_v31, %v3141_v8  ;;  %v2696_v33 = vpop.f32.mrb[23].mxu0  ;;  %v765_v34 = vsel %vm56_vm1, %v3278_v29, 0.0 }
 0x626   :  { %766 = vadd.xlane.f32.xlu1 %v765_v34 }
 0x627   :  { %v768_v35 = vsel %vm56_vm1, %v3284_v32, 0.0 }
 0x628   :  { %769 = vadd.xlane.f32.xlu0 %v768_v35 }
 0x6b3   :  { %v767_v37 = vpop.xlane.xlu1 %766 }
 0x6b4   :  { %v772_v38 = vmul.f32 0.03125, %v767_v37 }
 0x6b5   :  { %v770_v7 = vpop.xlane.xlu0 %769 }
 0x6b6   :  { %v774_v39 = vsub.f32 %v3278_v29, %v772_v38  ;;  %v773_v40 = vmul.f32 0.03125, %v770_v7 }
 0x6b8   :  { %v775_v41 = vsub.f32 %v3284_v32, %v773_v40  ;;  %v776_v42 = vmul.f32 %v774_v39, %v774_v39 }
 0x6ba   :  { %v778_v8 = vsel %vm56_vm1, %v776_v42, 0.0  ;;  %v777_v43 = vmul.f32 %v775_v41, %v775_v41 }
 0x6bb   :  { %779 = vadd.xlane.f32.xlu0 %v778_v8 }
 0x6bc   :  { %v781_v44 = vsel %vm56_vm1, %v777_v43, 0.0 }
 0x6bd   :  { %782 = vadd.xlane.f32.xlu1 %v781_v44 }
 0x748   :  { %v780_v52 = vpop.xlane.xlu0 %779 }
 0x749   :  { %v784_v53 = vmul.f32 0.03125, %v780_v52 }
 0x74a   :  { %v783_v55 = vpop.xlane.xlu1 %782 }
 0x74b   :  { %v786_v56 = vadd.f32 1e-05, %v784_v53  ;;  %v785_v57 = vmul.f32 0.03125, %v783_v55 }
 0x74d   :  { %2960 = vrsqrt.f32 %v786_v56  ;;  %v787_v58 = vadd.f32 1e-05, %v785_v57 }
 0x74f   :  { %2962 = vrsqrt.f32 %v787_v58 }
 0x757   :  { %v2961_v63 = vpop.eup %2960 }
 0x758   :  { %v790_v0 = vmul.f32 %v2961_v63, %v774_v39 }
 0x759   :  { %v2963_v4 = vpop.eup %2962 }
 0x75a   :  { %v796_v1 = vmul.f32 %v795_v61, %v790_v0  ;;  %v791_v2 = vmul.f32 %v2963_v4, %v775_v41 }
 0x75c   :  { %v797_v9 = vmul.f32 %v795_v61, %v791_v2  ;;  %v802_v10 = vadd.f32 %v801_v5, %v796_v1 }
 0x75e   :  { %v803_v11 = vadd.f32 %v801_v5, %v797_v9 }
 0x760   :  { %v804_v12 = vpack.c.bf16 %v803_v11, %v802_v10 }
 0x762   :  { %2702 = vmatmul.mubr.msk.bf16.vlgmr.msra.gmra.mrb[20].mxu1 %vm56_vm1, %v804_v12 }
 0x763   :  { %2713 = vmatprep.mubr.msk.bf16.mxu1 %vm3051_vm0, %v3050_v3 }
 0x835   :  { %v842_v13 = vpop.f32.mrb[20].mxu1 }
 0x836   :  { %v2703_v14 = vpop.f32.mrb[21].mxu1 }
 0x837   :  { %v845_v15 = vpop.f32.mrb[22].mxu1 }
 0x838   :  { %v3330_v16 = vpack.c.bf16 %v845_v15, %v842_v13  ;;  %v2704_v17 = vpop.f32.mrb[23].mxu1 }
 0x83a   :  { %976 = vrot.lane.b32.xlu1 %v3330_v16, %s3059_s21  ;;  %851 = vrot.lane.b32.xlu0 %v3330_v16, %s3052_s9 }
 0x83e   :  { %974 = vrot.lane.b32.xlu1 %v3330_v16, %s3054_s17  ;;  %1101 = vrot.lane.b32.xlu0 %v3330_v16, %s3057_s19 }
 0x842   :  { %1099 = vrot.lane.b32.xlu1 %v3330_v16, %s3053_s16  ;;  %1226 = vrot.lane.b32.xlu0 %v3330_v16, %s3058_s20 }
 0x846   :  { %1224 = vrot.lane.b32.xlu1 %v3330_v16, %s3055_s18 }
 0x8ac   :  { %v852_v18 = vpop.permute.xlu0 %851  ;;  %v977_v6 = vpop.permute.xlu1 %976 }
 0x8ad   :  { %v857_v19 = vsel %vm156_vm2, %v852_v18, 0  ;;  %v982_v20 = vsel %vm156_vm2, %v977_v6, 0 }
 0x8ae   :  { %2706 = vmatpush3.bf16.xpose.msra.mxu0 %v857_v19 }
 0x8af   :  { %2717 = vmatprep.subr.bf16.mxu0 %v3050_v3 }
 0x8b0   :  { %v1102_v21 = vpop.permute.xlu0 %1101  ;;  %v975_v22 = vpop.permute.xlu1 %974 }
 0x8b1   :  { %v1107_v24 = vsel %vm156_vm2, %v1102_v21, 0 }
 0x8b4   :  { %v1227_v25 = vpop.permute.xlu0 %1226  ;;  %v1100_v26 = vpop.permute.xlu1 %1099 }
 0x8b5   :  { %2708 = vmatmul.mubr.msk.bf16.vlgmr.msra.gmra.mrb[24].mxu0 %vm156_vm2, %v3330_v16  ;;  %v1232_v27 = vsel %vm156_vm2, %v1227_v25, 0 }
 0x8b6   :  { %2718 = vmatpush3.bf16.xpose.msra.mxu0 %v982_v20  ;;  %2719 = vmatprep.mubr.msk.bf16.mxu0 %vm3051_vm0, %v3050_v3 }
 0x8b7   :  { %2729 = vmatprep.subr.bf16.mxu0 %v3050_v3 }
 0x8b8   :  { %v1225_v23 = vpop.permute.xlu1 %1224 }
 0x8bd   :  { %2720 = vmatmul.mubr.msk.bf16.vlgmr.msra.gmra.mrb[28].mxu0 %vm156_vm2, %v975_v22 }
 0x8be   :  { %2730 = vmatpush3.bf16.xpose.msra.mxu0 %v1107_v24  ;;  %2731 = vmatprep.mubr.msk.bf16.mxu0 %vm3051_vm0, %v3050_v3 }
 0x8bf   :  { %2741 = vmatprep.subr.bf16.mxu0 %v3050_v3 }
 0x8c5   :  { %2732 = vmatmul.mubr.msk.bf16.vlgmr.msra.gmra.mrb[32].mxu0 %vm156_vm2, %v1100_v26 }
 0x8c6   :  { %2742 = vmatpush3.bf16.xpose.msra.mxu0 %v1232_v27  ;;  %2743 = vmatprep.mubr.msk.bf16.mxu0 %vm3051_vm0, %v3050_v3 }
 0x8c7   :  { %2753 = vmatprep.subr.bf16.mxu0 %v3050_v3 }
 0x8cd   :  { %2744 = vmatmul.mubr.msk.bf16.vlgmr.msra.gmra.mrb[36].mxu0 %vm156_vm2, %v1225_v23 }
 0x8ce   :  { %2757 = vmatprep.mubr.msk.bf16.mxu0 %vm3051_vm0, %v3050_v3 }
 0x988   :  { %v893_v30 = vpop.f32.mrb[24].mxu0 }
 0x989   :  { %v900_v33 = vmul.f32 0.35355338, %v893_v30  ;;  %v2709_v34 = vpop.f32.mrb[25].mxu0 }
 0x98a   :  { %v896_v35 = vpop.f32.mrb[26].mxu0 }
 0x98b   :  { %v901_v37 = vmul.f32 0.35355338, %v896_v35  ;;  %v2710_v38 = vpop.f32.mrb[27].mxu0  ;;  %v902_v7 = vadd.f32 %v900_v33, %v3200_v50 }
 0x98d   :  { %v904_v39 = vsel %vm208_vm5, %v902_v7, -inf  ;;  %v903_v40 = vadd.f32 %v901_v37, %v3202_v54 }
 0x98e   :  { %905 = vmax.xlane.f32.xlu0 %v904_v39 }
 0x98f   :  { %v907_v41 = vsel %vm208_vm5, %v903_v40, -inf }
 0x990   :  { %908 = vmax.xlane.f32.xlu1 %v907_v41  ;;  %v1018_v42 = vpop.f32.mrb[28].mxu0 }
 0x991   :  { %v1025_v8 = vmul.f32 0.35355338, %v1018_v42  ;;  %v2721_v43 = vpop.f32.mrb[29].mxu0 }
 0x992   :  { %v1021_v44 = vpop.f32.mrb[30].mxu0 }
 0x993   :  { %v1026_v45 = vmul.f32 0.35355338, %v1021_v44  ;;  %v2722_v46 = vpop.f32.mrb[31].mxu0  ;;  %v1027_v48 = vadd.f32 %v1025_v8, %v3200_v50 }
 0x995   :  { %v1029_v49 = vsel %vm208_vm5, %v1027_v48, -inf  ;;  %v1028_v52 = vadd.f32 %v1026_v45, %v3202_v54 }
 0x996   :  { %1030 = vmax.xlane.f32.xlu0 %v1029_v49 }
 0x997   :  { %v1032_v57 = vsel %vm208_vm5, %v1028_v52, -inf }
 0x998   :  { %v1143_v53 = vpop.f32.mrb[32].mxu0 }
 0x999   :  { %v1150_v55 = vmul.f32 0.35355338, %v1143_v53  ;;  %v2733_v56 = vpop.f32.mrb[33].mxu0 }
 0x99a   :  { %1033 = vmax.xlane.f32.xlu0 %v1032_v57  ;;  %v1146_v58 = vpop.f32.mrb[34].mxu0 }
 0x99b   :  { %v1151_v61 = vmul.f32 0.35355338, %v1146_v58  ;;  %v2734_v63 = vpop.f32.mrb[35].mxu0  ;;  %v1152_v0 = vadd.f32 %v1150_v55, %v3200_v50 }
 0x99d   :  { %v1154_v4 = vsel %vm208_vm5, %v1152_v0, -inf  ;;  %v1153_v1 = vadd.f32 %v1151_v61, %v3202_v54 }
 0x99e   :  { %1155 = vmax.xlane.f32.xlu1 %v1154_v4 }
 0x99f   :  { %v1157_v2 = vsel %vm208_vm5, %v1153_v1, -inf }
 0x9a0   :  { %1158 = vmax.xlane.f32.xlu0 %v1157_v2  ;;  %v1268_v5 = vpop.f32.mrb[36].mxu0 }
 0x9a1   :  { %v1275_v9 = vmul.f32 0.35355338, %v1268_v5  ;;  %v2745_v10 = vpop.f32.mrb[37].mxu0 }
 0x9a2   :  { %v1271_v11 = vpop.f32.mrb[38].mxu0 }
 0x9a3   :  { %v1276_v12 = vmul.f32 0.35355338, %v1271_v11  ;;  %v2746_v13 = vpop.f32.mrb[39].mxu0  ;;  %v1277_v14 = vadd.f32 %v1275_v9, %v3200_v50 }
 0x9a5   :  { %v1279_v15 = vsel %vm208_vm5, %v1277_v14, -inf  ;;  %v1278_v17 = vadd.f32 %v1276_v12, %v3202_v54 }
 0x9a6   :  { %1280 = vmax.xlane.f32.xlu1 %v1279_v15 }
 0x9a7   :  { %v1282_v18 = vsel %vm208_vm5, %v1278_v17, -inf }
 0x9a8   :  { %1283 = vmax.xlane.f32.xlu0 %v1282_v18 }
 0x9b7   :  { %927 = vrot.lane.b32.xlu1 %v3330_v16, %s3064_s0 }
 0xa1b   :  { %v906_v19 = vpop.xlane.xlu0 %905 }
 0xa1c   :  { %v910_v6 = vsub.f32 %v902_v7, %v906_v19 }
 0xa1d   :  { %v909_v20 = vpop.xlane.xlu1 %908 }
 0xa1e   :  { %v912_v21 = vmul.f32 1.442695, %v910_v6  ;;  %v911_v22 = vsub.f32 %v903_v40, %v909_v20 }
 0xa20   :  { %2964 = vpow2.f32 %v912_v21  ;;  %v914_v24 = vmul.f32 1.442695, %v911_v22 }
 0xa22   :  { %2966 = vpow2.f32 %v914_v24 }
 0xa23   :  { %v1031_v25 = vpop.xlane.xlu0 %1030 }
 0xa24   :  { %v1035_v26 = vsub.f32 %v1027_v48, %v1031_v25 }
 0xa26   :  { %v1037_v27 = vmul.f32 1.442695, %v1035_v26 }
 0xa27   :  { %v1034_v23 = vpop.xlane.xlu0 %1033 }
 0xa28   :  { %2968 = vpow2.f32 %v1037_v27  ;;  %v1036_v30 = vsub.f32 %v1028_v52, %v1034_v23 }
 0xa2a   :  { %v2965_v33 = vpop.eup %2964  ;;  %v1039_v34 = vmul.f32 1.442695, %v1036_v30 }
 0xa2b   :  { %v1156_v35 = vpop.xlane.xlu1 %1155  ;;  %v916_v37 = vsel %vm208_vm5, %v2965_v33, 0.0 }
 0xa2c   :  { %v2967_v38 = vpop.eup %2966  ;;  %2970 = vpow2.f32 %v1039_v34  ;;  %v1160_v7 = vsub.f32 %v1152_v0, %v1156_v35  ;;  %917 = vadd.xlane.f32.xlu1 %v916_v37 }
 0xa2d   :  { %v1159_v39 = vpop.xlane.xlu0 %1158  ;;  %v919_v40 = vsel %vm208_vm5, %v2967_v38, 0.0 }
 0xa2e   :  { %v1162_v41 = vmul.f32 1.442695, %v1160_v7  ;;  %v1161_v42 = vsub.f32 %v1153_v1, %v1159_v39  ;;  %920 = vadd.xlane.f32.xlu0 %v919_v40 }
 0xa30   :  { %2972 = vpow2.f32 %v1162_v41  ;;  %v1164_v8 = vmul.f32 1.442695, %v1161_v42 }
 0xa32   :  { %v2969_v43 = vpop.eup %2968  ;;  %2974 = vpow2.f32 %v1164_v8 }
 0xa33   :  { %v1281_v44 = vpop.xlane.xlu1 %1280  ;;  %v1041_v45 = vsel %vm208_vm5, %v2969_v43, 0.0 }
 0xa34   :  { %v1285_v46 = vsub.f32 %v1277_v14, %v1281_v44  ;;  %1042 = vadd.xlane.f32.xlu1 %v1041_v45 }
 0xa35   :  { %v1284_v48 = vpop.xlane.xlu0 %1283 }
 0xa36   :  { %v2971_v49 = vpop.eup %2970  ;;  %v1287_v52 = vmul.f32 1.442695, %v1285_v46  ;;  %v1286_v53 = vsub.f32 %v1278_v17, %v1284_v48 }
 0xa37   :  { %v928_v55 = vpop.permute.xlu1 %927  ;;  %v1044_v56 = vsel %vm208_vm5, %v2971_v49, 0.0 }
 0xa38   :  { %2976 = vpow2.f32 %v1287_v52  ;;  %v1289_v57 = vmul.f32 1.442695, %v1286_v53  ;;  %2712 = vmatpush3.bf16.msra.mxu1 %v928_v55  ;;  %1045 = vadd.xlane.f32.xlu0 %v1044_v56 }
 0xa39   :  { %2723 = vmatprep.subr.bf16.mxu1 %v3050_v3 }
 0xa3a   :  { %v2973_v58 = vpop.eup %2972  ;;  %2978 = vpow2.f32 %v1289_v57 }
 0xa3b   :  { %v1166_v61 = vsel %vm208_vm5, %v2973_v58, 0.0 }
 0xa3c   :  { %v2975_v63 = vpop.eup %2974  ;;  %1167 = vadd.xlane.f32.xlu1 %v1166_v61 }
 0xa3d   :  { %v1169_v0 = vsel %vm208_vm5, %v2975_v63, 0.0 }
 0xa3e   :  { %1170 = vadd.xlane.f32.xlu0 %v1169_v0 }
 0xa42   :  { %v2977_v4 = vpop.eup %2976 }
 0xa43   :  { %v1291_v1 = vsel %vm208_vm5, %v2977_v4, 0.0 }
 0xa44   :  { %v2979_v2 = vpop.eup %2978  ;;  %1292 = vadd.xlane.f32.xlu1 %v1291_v1 }
 0xa45   :  { %v1294_v5 = vsel %vm208_vm5, %v2979_v2, 0.0 }
 0xa46   :  { %1295 = vadd.xlane.f32.xlu0 %v1294_v5 }
 0xa55   :  { %1177 = vrot.lane.b32.xlu1 %v3330_v16, %s3065_s13 }
 0xa59   :  { %1302 = vrot.lane.b32.xlu1 %v3330_v16, %s3066_s14 }
 0xa5c   :  { %1052 = vrot.lane.b32.xlu0 %v3330_v16, %s3067_s15 }
 0xa60   :  { %1382 = vrot.lane.b32.xlu0 %v3300_v47, %s3060_s22 }
 0xab9   :  { %v918_v9 = vpop.xlane.xlu1 %917 }
 0xaba   :  { %2980 = vrcp.f32 %v918_v9 }
 0xabb   :  { %v921_v10 = vpop.xlane.xlu0 %920 }
 0xabc   :  { %2982 = vrcp.f32 %v921_v10 }
 0xac1   :  { %v1043_v17 = vpop.xlane.xlu1 %1042 }
 0xac4   :  { %v2981_v11 = vpop.eup %2980 }
 0xac5   :  { %v1046_v12 = vpop.xlane.xlu0 %1045  ;;  %v924_v14 = vmul.f32 %v2981_v11, %v2965_v33 }
 0xac6   :  { %v2983_v13 = vpop.eup %2982  ;;  %2984 = vrcp.f32 %v1046_v12 }
 0xac7   :  { %v925_v15 = vmul.f32 %v2983_v13, %v2967_v38  ;;  %2986 = vrcp.f32 %v1043_v17 }
 0xac9   :  { %v926_v18 = vpack.c.bf16 %v925_v15, %v924_v14  ;;  %v1168_v47 = vpop.xlane.xlu1 %1167 }
 0xacb   :  { %2714 = vmatmul.mubr.msk.bf16.vlgmr.msra.gmra.mrb[24].mxu1 %vm208_vm5, %v926_v18  ;;  %v1171_v16 = vpop.xlane.xlu0 %1170 }
 0xacc   :  { %2725 = vmatprep.mubr.msk.bf16.mxu1 %vm3051_vm0, %v3050_v3  ;;  %2988 = vrcp.f32 %v1171_v16 }
 0xacd   :  { %2990 = vrcp.f32 %v1168_v47 }
 0xad0   :  { %v2985_v19 = vpop.eup %2984 }
 0xad1   :  { %v2987_v20 = vpop.eup %2986  ;;  %v1050_v21 = vmul.f32 %v2985_v19, %v2971_v49  ;;  %v1293_v22 = vpop.xlane.xlu1 %1292 }
 0xad2   :  { %v1049_v24 = vmul.f32 %v2987_v20, %v2969_v43 }
 0xad3   :  { %v1296_v6 = vpop.xlane.xlu0 %1295 }
 0xad4   :  { %2992 = vrcp.f32 %v1296_v6  ;;  %v1051_v26 = vpack.c.bf16 %v1050_v21, %v1049_v24 }
 0xad5   :  { %2994 = vrcp.f32 %v1293_v22  ;;  %v1178_v23 = vpop.permute.xlu1 %1177 }
 0xad6   :  { %v2989_v27 = vpop.eup %2988 }
 0xad7   :  { %v1053_v25 = vpop.permute.xlu0 %1052  ;;  %v2991_v30 = vpop.eup %2990  ;;  %v1175_v33 = vmul.f32 %v2989_v27, %v2975_v63  ;;  %v3048_v27 = vld [vmem:[%s3786_s1 + $0x8] sm:$0xff] }
 0xad8   :  { %2724 = vmatpush3.bf16.msra.mxu1 %v1053_v25  ;;  %v1174_v34 = vmul.f32 %v2991_v30, %v2973_v58 }
 0xad9   :  { %2735 = vmatprep.subr.bf16.mxu1 %v3050_v3  ;;  %v1303_v38 = vpop.permute.xlu1 %1302 }
 0xada   :  { %v1176_v35 = vpack.c.bf16 %v1175_v33, %v1174_v34 }
 0xadb   :  { %2726 = vmatmul.mubr.msk.bf16.vlgmr.msra.gmra.mrb[28].mxu1 %vm208_vm5, %v1051_v26  ;;  %v1383_v45 = vpop.permute.xlu0 %1382 }
 0xadc   :  { %2736 = vmatpush3.bf16.msra.mxu1 %v1178_v23  ;;  %2737 = vmatprep.mubr.msk.bf16.mxu1 %vm3051_vm0, %v3050_v3  ;;  %v3440_v23 = vadd.f32 %v3048_v27, %v3280_v31 }
 0xadd   :  { %2747 = vmatprep.subr.bf16.mxu1 %v3050_v3  ;;  %2754 = vmatpush3.bf16.msra.mxu0 %v1383_v45 }
 0xade   :  { %v2993_v37 = vpop.eup %2992  ;;  %2755 = vmatprep.subr.bf16.mxu0 %v3050_v3  ;;  %v1627_v31 = vsel %vm56_vm1, %v3440_v23, 0.0 }
 0xadf   :  { %v2995_v7 = vpop.eup %2994  ;;  %v1300_v39 = vmul.f32 %v2993_v37, %v2979_v2 }
 0xae0   :  { %v1299_v40 = vmul.f32 %v2995_v7, %v2977_v4 }
 0xae2   :  { %v1301_v41 = vpack.c.bf16 %v1300_v39, %v1299_v40 }
 0xae3   :  { %2738 = vmatmul.mubr.msk.bf16.vlgmr.msra.gmra.mrb[32].mxu1 %vm208_vm5, %v1176_v35 }
 0xae4   :  { %2748 = vmatpush3.bf16.msra.mxu1 %v1303_v38  ;;  %2749 = vmatprep.mubr.msk.bf16.mxu1 %vm3051_vm0, %v3050_v3 }
 0xae5   :  { %2761 = vmatprep.subr.bf16.mxu1 %v3050_v3 }
 0xaeb   :  { %2750 = vmatmul.mubr.msk.bf16.vlgmr.msra.gmra.mrb[36].mxu1 %vm208_vm5, %v1301_v41 }
 0xaec   :  { %2765 = vmatprep.mubr.msk.bf16.mxu1 %vm3051_vm0, %v3050_v3 }
 0xb9e   :  { %v967_v42 = vpop.f32.mrb[24].mxu1 }
 0xb9f   :  { %v2715_v8 = vpop.f32.mrb[25].mxu1 }
 0xba0   :  { %v970_v43 = vpop.f32.mrb[26].mxu1 }
 0xba1   :  { %v2716_v44 = vpop.f32.mrb[27].mxu1 }
 0xbae   :  { %v1092_v46 = vpop.f32.mrb[28].mxu1 }
 0xbaf   :  { %v2727_v48 = vpop.f32.mrb[29].mxu1 }
 0xbb0   :  { %v1095_v49 = vpop.f32.mrb[30].mxu1 }
 0xbb1   :  { %v2898_v52 = vpack.i.bf16 %v1095_v49, %v1092_v46  ;;  %v2728_v53 = vpop.f32.mrb[31].mxu1 }
 0xbb3   :  { %2899 = vrot.lane.b32.xlu1 %v2898_v52, %s3061_s23 }
 0xbb6   :  { %v1217_v55 = vpop.f32.mrb[32].mxu1 }
 0xbb7   :  { %v2739_v56 = vpop.f32.mrb[33].mxu1 }
 0xbb8   :  { %v1220_v57 = vpop.f32.mrb[34].mxu1 }
 0xbb9   :  { %v2903_v58 = vpack.i.bf16 %v1220_v57, %v1217_v55  ;;  %v2740_v61 = vpop.f32.mrb[35].mxu1 }
 0xbba   :  { %v746_v61 = vld [vmem:[%s3789_s4] sm:$0xff] }
 0xbbb   :  { %2904 = vrot.lane.b32.xlu0 %v2903_v58, %s3062_s24 }
 0xbbe   :  { %v1342_v63 = vpop.f32.mrb[36].mxu1 }
 0xbbf   :  { %v2751_v0 = vpop.f32.mrb[37].mxu1  ;;  %1384 = vrot.lane.b32.xlu0 %v3310_v51, %s3060_s22 }
 0xbc0   :  { %v1345_v4 = vpop.f32.mrb[38].mxu1 }
 0xbc1   :  { %v2908_v1 = vpack.i.bf16 %v1345_v4, %v1342_v63  ;;  %v2752_v2 = vpop.f32.mrb[39].mxu1  ;;  %v747_v63 = vld [vmem:[%s3789_s4 + $0x8] sm:$0xff]  ;;  %v748_v4 = vld [vmem:[%s3789_s4 + $0x10] sm:$0xff] }
 0xbc2   :  { %v750_v0 = vpack.c.bf16 %v747_v63, %v746_v61  ;;  %v756_v61 = vld [vmem:[%s3790_s5 + $0x20] sm:$0xff]  ;;  %v757_v63 = vld [vmem:[%s3790_s5 + $0x28] sm:$0xff] }
 0xbc3   :  { %2909 = vrot.lane.b32.xlu1 %v2908_v1, %s3063_s25  ;;  %v749_v1 = vld [vmem:[%s3789_s4 + $0x18] sm:$0xff] }
 0xbc4   :  { %2762 = vmatpush3.bf16.msra.mxu1 %v750_v0  ;;  %v751_v2 = vpack.c.bf16 %v749_v1, %v748_v4  ;;  %v762_v0 = vpack.c.bf16 %v757_v63, %v756_v61  ;;  %v758_v4 = vld [vmem:[%s3790_s5 + $0x30] sm:$0xff]  ;;  %v759_v1 = vld [vmem:[%s3790_s5 + $0x38] sm:$0xff] }
 0xbc5   :  { %2763 = vmatprep.subr.bf16.mxu1 %v3050_v3 }
 0xbc8   :  { %2764 = vmatpush3.bf16.msra.mxu1 %v751_v2  ;;  %v763_v2 = vpack.c.bf16 %v759_v1, %v758_v4 }
 0xbc9   :  { %2781 = vmatprep.subr.bf16.mxu1 %v3050_v3 }
 0xc25   :  { %v2900_v9 = vpop.permute.xlu1 %2899 }
 0xc26   :  { %v2902_v11 = vunpack.i.h.bf16 %v2900_v9  ;;  %v2901_v12 = vunpack.i.l.bf16 %v2900_v9 }
 0xc28   :  { %v1374_v17 = vsel %vm156_vm2, %v970_v43, %v2902_v11  ;;  %v1373_v51 = vsel %vm156_vm2, %v967_v42, %v2901_v12 }
 0xc2d   :  { %v2905_v5 = vpop.permute.xlu0 %2904 }
 0xc2e   :  { %v2907_v13 = vunpack.i.h.bf16 %v2905_v5  ;;  %v2906_v14 = vunpack.i.l.bf16 %v2905_v5 }
 0xc30   :  { %v1376_v47 = vsel %vm208_vm5, %v1374_v17, %v2907_v13  ;;  %v1375_v19 = vsel %vm208_vm5, %v1373_v51, %v2906_v14 }
 0xc31   :  { %v1385_v10 = vpop.permute.xlu0 %1384 }
 0xc32   :  { %2756 = vmatpush3.bf16.msra.mxu0 %v1385_v10 }
 0xc33   :  { %2769 = vmatprep.subr.bf16.mxu0 %v3050_v3 }
 0xc35   :  { %v2910_v15 = vpop.permute.xlu1 %2909 }
 0xc36   :  { %v2912_v18 = vunpack.i.h.bf16 %v2910_v15  ;;  %v2911_v16 = vunpack.i.l.bf16 %v2910_v15 }
 0xc38   :  { %v1377_v6 = vsel %vm684_vm6, %v1375_v19, %v2911_v16  ;;  %v1378_v20 = vsel %vm684_vm6, %v1376_v47, %v2912_v18  ;;  %v1462_v47 = vsub.s32 2, %v3196_v36 }
 0xc39   :  { %v1379_v21 = vpack.c.bf16 %v1378_v20, %v1377_v6  ;;  %v1468_v6 = vsub.s32 3, %v3196_v36 }
 0xc3a   :  { %v1463_v19 = vrot.slane %v3318_v60, %v1462_v47 }
 0xc3b   :  { %2758 = vmatmul.mubr.msk.bf16.vlgmr.msra.gmra.mrb[40].mxu0 %vm56_vm1, %v1379_v21 }
 0xc3c   :  { %2777 = vmatprep.mubr.msk.bf16.mxu0 %vm3051_vm0, %v3050_v3 }
 0xd0e   :  { %v1425_v22 = vpop.f32.mrb[40].mxu0 }
 0xd0f   :  { %v3434_v24 = vadd.f32 %v1425_v22, %v3278_v29  ;;  %v2759_v25 = vpop.f32.mrb[41].mxu0  ;;  %v3049_v29 = vld [vmem:[%s3786_s1] sm:$0xff] }
 0xd10   :  { %v1428_v26 = vpop.f32.mrb[42].mxu0  ;;  %v3451_v35 = vadd.f32 %v3049_v29, %v3274_v28  ;;  %v3489_v25 = vld [vmem:[%s3788_s6 + $0x8] sm:$0x3f] }
 0xd11   :  { %v3443_v30 = vadd.f32 %v1428_v26, %v3284_v32  ;;  %v2760_v33 = vpop.f32.mrb[43].mxu0  ;;  %v1434_v34 = vsel %vm56_vm1, %v3434_v24, 0.0  ;;  %v1653_v29 = vrot.slane %v3489_v25, %v794_v59  ;;  %v2513_v59 = vld [vmem:[%s3787_s3 + $0x30] sm:$0xff] }
 0xd12   :  { %1435 = vadd.xlane.f32.xlu1 %v1434_v34  ;;  %v1624_v32 = vsel %vm56_vm1, %v3451_v35, 0.0  ;;  %v1469_v33 = vrot.slane %v3318_v60, %v1468_v6 }
 0xd13   :  { %v1437_v37 = vsel %vm56_vm1, %v3443_v30, 0.0 }
 0xd14   :  { %1438 = vadd.xlane.f32.xlu0 %v1437_v37  ;;  %v2511_v37 = vld [vmem:[%s3787_s3 + $0x20] sm:$0xff] }
 0xd16   :  { %1628 = vadd.xlane.f32.xlu1 %v1627_v31  ;;  %v2512_v31 = vld [vmem:[%s3787_s3 + $0x28] sm:$0xff] }
 0xd18   :  { %1625 = vadd.xlane.f32.xlu0 %v1624_v32 }
 0xd9f   :  { %v1436_v38 = vpop.xlane.xlu1 %1435 }
 0xda0   :  { %v1440_v7 = vmul.f32 0.03125, %v1436_v38 }
 0xda1   :  { %v1439_v39 = vpop.xlane.xlu0 %1438 }
 0xda2   :  { %v1442_v40 = vsub.f32 %v3434_v24, %v1440_v7  ;;  %v1441_v41 = vmul.f32 0.03125, %v1439_v39 }
 0xda3   :  { %v1629_v28 = vpop.xlane.xlu1 %1628 }
 0xda4   :  { %v1443_v42 = vsub.f32 %v3443_v30, %v1441_v41  ;;  %v1631_v8 = vmul.f32 0.03125, %v1629_v28  ;;  %v1444_v43 = vmul.f32 %v1442_v40, %v1442_v40  ;;  %v3503_v28 = vpack.c.bf16 %v2512_v31, %v2511_v37 }
 0xda5   :  { %v1626_v44 = vpop.xlane.xlu0 %1625 }
 0xda6   :  { %v1633_v45 = vsub.f32 %v3440_v23, %v1631_v8  ;;  %v1630_v46 = vmul.f32 0.03125, %v1626_v44  ;;  %v1446_v48 = vsel %vm56_vm1, %v1444_v43, 0.0  ;;  %v1445_v49 = vmul.f32 %v1443_v42, %v1443_v42  ;;  %v2514_v43 = vld [vmem:[%s3787_s3 + $0x38] sm:$0xff] }
 0xda7   :  { %1447 = vadd.xlane.f32.xlu0 %v1446_v48  ;;  %v1659_v44 = vrot.slane %v3489_v25, %v800_v62  ;;  %v752_v62 = vld [vmem:[%s3790_s5] sm:$0xff] }
 0xda8   :  { %v1632_v52 = vsub.f32 %v3451_v35, %v1630_v46  ;;  %v1449_v53 = vsel %vm56_vm1, %v1445_v49, 0.0  ;;  %v1635_v55 = vmul.f32 %v1633_v45, %v1633_v45  ;;  %v3516_v46 = vpack.c.bf16 %v2514_v43, %v2513_v59 }
 0xda9   :  { %1450 = vadd.xlane.f32.xlu1 %v1449_v53  ;;  %v753_v53 = vld [vmem:[%s3790_s5 + $0x8] sm:$0xff] }
 0xdaa   :  { %v1634_v56 = vmul.f32 %v1632_v52, %v1632_v52  ;;  %v1639_v57 = vsel %vm56_vm1, %v1635_v55, 0.0  ;;  %v760_v55 = vpack.c.bf16 %v753_v53, %v752_v62 }
 0xdac   :  { %v1636_v58 = vsel %vm56_vm1, %v1634_v56, 0.0  ;;  %2770 = vmatpush3.bf16.msra.mxu0 %v760_v55  ;;  %v754_v56 = vld [vmem:[%s3790_s5 + $0x10] sm:$0xff] }
 0xdad   :  { %1640 = vadd.xlane.f32.xlu1 %v1639_v57  ;;  %1637 = vadd.xlane.f32.xlu0 %v1636_v58  ;;  %v755_v57 = vld [vmem:[%s3790_s5 + $0x18] sm:$0xff] }
 0xdae   :  { %2771 = vmatprep.subr.bf16.mxu0 %v3050_v3  ;;  %v761_v58 = vpack.c.bf16 %v755_v57, %v754_v56 }
 0xdb0   :  { %2772 = vmatpush3.bf16.msra.mxu0 %v761_v58  ;;  %v1589_v58 = vsub.s32 5, %v3196_v36 }
 0xdb1   :  { %2773 = vmatprep.subr.bf16.mxu0 %v3050_v3 }
 0xdb2   :  { %v1590_v61 = vrot.slane %v3318_v60, %v1589_v58 }
 0xdb4   :  { %2774 = vmatpush3.bf16.msra.mxu0 %v762_v0 }
 0xdb5   :  { %2775 = vmatprep.subr.bf16.mxu0 %v3050_v3 }
 0xdb8   :  { %2776 = vmatpush3.bf16.msra.mxu0 %v763_v2 }
 0xdb9   :  { %2795 = vmatprep.subr.bf16.mxu0 %v3050_v3 }
 0xe34   :  { %v1448_v5 = vpop.xlane.xlu0 %1447 }
 0xe35   :  { %v1452_v9 = vmul.f32 0.03125, %v1448_v5  ;;  %v1475_v5 = vsub.s32 4, %v3196_v36 }
 0xe36   :  { %v1451_v10 = vpop.xlane.xlu1 %1450 }
 0xe37   :  { %v1454_v11 = vadd.f32 1e-05, %v1452_v9  ;;  %v1453_v12 = vmul.f32 0.03125, %v1451_v10  ;;  %v1476_v9 = vrot.slane %v3318_v60, %v1475_v5 }
 0xe39   :  { %2996 = vrsqrt.f32 %v1454_v11  ;;  %v1455_v13 = vadd.f32 1e-05, %v1453_v12 }
 0xe3a   :  { %v1641_v14 = vpop.xlane.xlu1 %1640  ;;  %v1638_v15 = vpop.xlane.xlu0 %1637 }
 0xe3b   :  { %2998 = vrsqrt.f32 %v1455_v13  ;;  %v1643_v17 = vmul.f32 0.03125, %v1641_v14  ;;  %v1642_v51 = vmul.f32 0.03125, %v1638_v15 }
 0xe3d   :  { %v1645_v18 = vadd.f32 1e-05, %v1643_v17  ;;  %v1644_v16 = vadd.f32 1e-05, %v1642_v51 }
 0xe3f   :  { %3000 = vrsqrt.f32 %v1645_v18 }
 0xe40   :  { %3002 = vrsqrt.f32 %v1644_v16 }
 0xe43   :  { %v2997_v20 = vpop.eup %2996 }
 0xe44   :  { %v1458_v21 = vmul.f32 %v2997_v20, %v1442_v40 }
 0xe45   :  { %v2999_v22 = vpop.eup %2998 }
 0xe46   :  { %v1464_v26 = vmul.f32 %v1463_v19, %v1458_v21  ;;  %v1459_v27 = vmul.f32 %v2999_v22, %v1443_v42 }
 0xe48   :  { %v1465_v34 = vmul.f32 %v1463_v19, %v1459_v27  ;;  %v1470_v39 = vadd.f32 %v1469_v33, %v1464_v26 }
 0xe49   :  { %v3001_v32 = vpop.eup %3000 }
 0xe4a   :  { %v3003_v38 = vpop.eup %3002  ;;  %v1649_v7 = vmul.f32 %v3001_v32, %v1633_v45  ;;  %v1471_v40 = vadd.f32 %v1469_v33, %v1465_v34 }
 0xe4b   :  { %v1648_v41 = vmul.f32 %v3003_v38, %v1632_v52 }
 0xe4c   :  { %v1655_v42 = vmul.f32 %v1653_v29, %v1649_v7  ;;  %v1472_v8 = vpack.c.bf16 %v1471_v40, %v1470_v39 }
 0xe4d   :  { %v1654_v45 = vmul.f32 %v1653_v29, %v1648_v41 }
 0xe4e   :  { %2766 = vmatmul.mubr.msk.bf16.vlgmr.msra.gmra.mrb[40].mxu1 %vm56_vm1, %v1472_v8  ;;  %v1661_v49 = vadd.f32 %v1659_v44, %v1655_v42 }
 0xe4f   :  { %2782 = vmatpush3.bf16.msra.mxu1 %v3503_v28  ;;  %2785 = vmatprep.mubr.msk.bf16.mxu1 %vm3051_vm0, %v3050_v3  ;;  %v1660_v48 = vadd.f32 %v1659_v44, %v1654_v45 }
 0xe50   :  { %2783 = vmatprep.subr.bf16.mxu1 %v3050_v3 }
 0xe51   :  { %v1662_v52 = vpack.c.bf16 %v1661_v49, %v1660_v48 }
 0xe53   :  { %2784 = vmatpush3.bf16.msra.mxu1 %v3516_v46 }
 0xe54   :  { %2789 = vmatprep.subr.bf16.mxu1 %v3050_v3 }
 0xe56   :  { %2786 = vmatmul.mubr.msk.bf16.vlgmr.msra.gmra.mrb[44].mxu1 %vm56_vm1, %v1662_v52 }
 0xe57   :  { %2791 = vmatprep.mubr.msk.bf16.mxu1 %vm3051_vm0, %v3050_v3 }
 0xf21   :  { %v1514_v10 = vpop.f32.mrb[40].mxu1 }
 0xf22   :  { %v1515_v11 = vadd.f32 %v1514_v10, %v1476_v9  ;;  %v2767_v12 = vpop.f32.mrb[41].mxu1 }
 0xf23   :  { %v1517_v13 = vpop.f32.mrb[42].mxu1 }
 0xf24   :  { %v1521_v14 = vmul.f32 %v1515_v11, %v1515_v11  ;;  %v1518_v15 = vadd.f32 %v1517_v13, %v1476_v9  ;;  %v2768_v17 = vpop.f32.mrb[43].mxu1 }
 0xf26   :  { %v1523_v51 = vmul.f32 %v1521_v14, %v1515_v11  ;;  %v1522_v18 = vmul.f32 %v1518_v15, %v1518_v15 }
 0xf28   :  { %v1525_v16 = vmul.f32 0.044715, %v1523_v51  ;;  %v1524_v19 = vmul.f32 %v1522_v18, %v1518_v15 }
 0xf29   :  { %v1700_v20 = vpop.f32.mrb[44].mxu1 }
 0xf2a   :  { %v1527_v21 = vadd.f32 %v1525_v16, %v1515_v11  ;;  %v1526_v22 = vmul.f32 0.044715, %v1524_v19  ;;  %v2787_v26 = vpop.f32.mrb[45].mxu1 }
 0xf2b   :  { %v1703_v27 = vpop.f32.mrb[46].mxu1 }
 0xf2c   :  { %v1529_v33 = vmul.f32 0.7978846, %v1527_v21  ;;  %v1528_v34 = vadd.f32 %v1526_v22, %v1518_v15  ;;  %v3558_v29 = vpack.c.bf16 %v1703_v27, %v1700_v20  ;;  %v2788_v37 = vpop.f32.mrb[47].mxu1 }
 0xf2e   :  { %3004 = vtanh.f32 %v1529_v33  ;;  %v1530_v31 = vmul.f32 0.7978846, %v1528_v34  ;;  %1834 = vrot.lane.b32.xlu1 %v3558_v29, %s3059_s21  ;;  %1709 = vrot.lane.b32.xlu0 %v3558_v29, %s3052_s9 }
 0xf30   :  { %3006 = vtanh.f32 %v1530_v31 }
 0xf32   :  { %1832 = vrot.lane.b32.xlu1 %v3558_v29, %s3054_s17  ;;  %1959 = vrot.lane.b32.xlu0 %v3558_v29, %s3057_s19 }
 0xf36   :  { %1957 = vrot.lane.b32.xlu1 %v3558_v29, %s3053_s16  ;;  %2084 = vrot.lane.b32.xlu0 %v3558_v29, %s3058_s20 }
 0xf38   :  { %v3005_v32 = vpop.eup %3004 }
 0xf39   :  { %v1533_v38 = vadd.f32 1.0, %v3005_v32 }
 0xf3a   :  { %v3007_v7 = vpop.eup %3006  ;;  %2082 = vrot.lane.b32.xlu1 %v3558_v29, %s3055_s18 }
 0xf3b   :  { %v1535_v39 = vmul.f32 0.5, %v1533_v38  ;;  %v1534_v40 = vadd.f32 1.0, %v3007_v7 }
 0xf3d   :  { %v1536_v41 = vmul.f32 0.5, %v1534_v40  ;;  %v1537_v42 = vmul.f32 %v1535_v39, %v1515_v11 }
 0xf3f   :  { %v1538_v8 = vmul.f32 %v1536_v41, %v1518_v15 }
 0xf41   :  { %v1539_v59 = vpack.c.bf16 %v1538_v8, %v1537_v42 }
 0xf43   :  { %2778 = vmatmul.mubr.msk.bf16.vlgmr.msra.gmra.mrb[44].mxu0 %vm1540_vm7, %v1539_v59 }
 0xf44   :  { %2797 = vmatprep.mubr.msk.bf16.mxu0 %vm3051_vm0, %v3050_v3 }
 0xfa0   :  { %v1710_v43 = vpop.permute.xlu0 %1709  ;;  %v1835_v45 = vpop.permute.xlu1 %1834 }
 0xfa1   :  { %v1715_v44 = vsel %vm156_vm2, %v1710_v43, 0  ;;  %v1840_v48 = vsel %vm156_vm2, %v1835_v45, 0 }
 0xfa2   :  { %2790 = vmatpush3.bf16.xpose.msra.mxu1 %v1715_v44 }
 0xfa3   :  { %2801 = vmatprep.subr.bf16.mxu1 %v3050_v3 }
 0xfa4   :  { %v1960_v49 = vpop.permute.xlu0 %1959  ;;  %v1833_v52 = vpop.permute.xlu1 %1832 }
 0xfa5   :  { %v1965_v62 = vsel %vm156_vm2, %v1960_v49, 0 }
 0xfa8   :  { %v2085_v53 = vpop.permute.xlu0 %2084  ;;  %v1958_v55 = vpop.permute.xlu1 %1957 }
 0xfa9   :  { %2792 = vmatmul.mubr.msk.bf16.vlgmr.msra.gmra.mrb[48].mxu1 %vm156_vm2, %v3558_v29  ;;  %v2090_v56 = vsel %vm156_vm2, %v2085_v53, 0 }
 0xfaa   :  { %2802 = vmatpush3.bf16.xpose.msra.mxu1 %v1840_v48  ;;  %2803 = vmatprep.mubr.msk.bf16.mxu1 %vm3051_vm0, %v3050_v3 }
 0xfab   :  { %2813 = vmatprep.subr.bf16.mxu1 %v3050_v3 }
 0xfac   :  { %v2083_v57 = vpop.permute.xlu1 %2082 }
 0xfb1   :  { %2804 = vmatmul.mubr.msk.bf16.vlgmr.msra.gmra.mrb[52].mxu1 %vm156_vm2, %v1833_v52 }
 0xfb2   :  { %2814 = vmatpush3.bf16.xpose.msra.mxu1 %v1965_v62  ;;  %2815 = vmatprep.mubr.msk.bf16.mxu1 %vm3051_vm0, %v3050_v3 }
 0xfb3   :  { %2825 = vmatprep.subr.bf16.mxu1 %v3050_v3 }
 0xfb9   :  { %2816 = vmatmul.mubr.msk.bf16.vlgmr.msra.gmra.mrb[56].mxu1 %vm156_vm2, %v1958_v55 }
 0xfba   :  { %2826 = vmatpush3.bf16.xpose.msra.mxu1 %v2090_v56  ;;  %2827 = vmatprep.mubr.msk.bf16.mxu1 %vm3051_vm0, %v3050_v3 }
 0xfbb   :  { %2837 = vmatprep.subr.bf16.mxu1 %v3050_v3 }
 0xfc1   :  { %2828 = vmatmul.mubr.msk.bf16.vlgmr.msra.gmra.mrb[60].mxu1 %vm156_vm2, %v2083_v57 }
 0xfc2   :  { %2841 = vmatprep.mubr.msk.bf16.mxu1 %vm3051_vm0, %v3050_v3 }
0x1016   :  { %v1578_v63 = vpop.f32.mrb[44].mxu0 }
0x1017   :  { %v1585_v0 = vadd.f32 %v1578_v63, %v3434_v24  ;;  %v2779_v4 = vpop.f32.mrb[45].mxu0 }
0x1018   :  { %v1581_v1 = vpop.f32.mrb[46].mxu0 }
0x1019   :  { %v3603_v2 = vadd.f32 %v1590_v61, %v1585_v0  ;;  %v1586_v9 = vadd.f32 %v1581_v1, %v3443_v30  ;;  %v2780_v10 = vpop.f32.mrb[47].mxu0 }
0x101b   :  { %2451 = vst.msk [vmem:[%s3791_s7] sm:$0xf] %vm2450_vm8, %v3603_v2  ;;  %v3611_v11 = vadd.f32 %v1590_v61, %v1586_v9 }
0x107c   :  { %v1751_v60 = vpop.f32.mrb[48].mxu1 }
0x107d   :  { %v1758_v12 = vmul.f32 0.35355338, %v1751_v60  ;;  %v2793_v13 = vpop.f32.mrb[49].mxu1 }
0x107e   :  { %v1754_v24 = vpop.f32.mrb[50].mxu1 }
0x107f   :  { %v1759_v14 = vmul.f32 0.35355338, %v1754_v24  ;;  %v2794_v15 = vpop.f32.mrb[51].mxu1  ;;  %v1760_v17 = vadd.f32 %v1758_v12, %v3200_v50 }
0x1081   :  { %v1762_v51 = vsel %vm208_vm5, %v1760_v17, -inf  ;;  %v1761_v30 = vadd.f32 %v1759_v14, %v3202_v54 }
0x1082   :  { %1763 = vmax.xlane.f32.xlu0 %v1762_v51 }
0x1083   :  { %v1765_v18 = vsel %vm208_vm5, %v1761_v30, -inf }
0x1084   :  { %1766 = vmax.xlane.f32.xlu1 %v1765_v18  ;;  %v1876_v16 = vpop.f32.mrb[52].mxu1 }
0x1085   :  { %v1883_v19 = vmul.f32 0.35355338, %v1876_v16  ;;  %v2805_v20 = vpop.f32.mrb[53].mxu1 }
0x1086   :  { %v1879_v21 = vpop.f32.mrb[54].mxu1 }
0x1087   :  { %v1884_v22 = vmul.f32 0.35355338, %v1879_v21  ;;  %v2806_v26 = vpop.f32.mrb[55].mxu1  ;;  %v1885_v27 = vadd.f32 %v1883_v19, %v3200_v50 }
0x1089   :  { %v1887_v33 = vsel %vm208_vm5, %v1885_v27, -inf  ;;  %v1886_v34 = vadd.f32 %v1884_v22, %v3202_v54 }
0x108a   :  { %1888 = vmax.xlane.f32.xlu0 %v1887_v33 }
0x108b   :  { %v1890_v38 = vsel %vm208_vm5, %v1886_v34, -inf }
0x108c   :  { %v2001_v37 = vpop.f32.mrb[56].mxu1 }
0x108d   :  { %v2008_v31 = vmul.f32 0.35355338, %v2001_v37  ;;  %v2817_v32 = vpop.f32.mrb[57].mxu1 }
0x108e   :  { %1891 = vmax.xlane.f32.xlu0 %v1890_v38  ;;  %v2004_v7 = vpop.f32.mrb[58].mxu1 }
0x108f   :  { %v2009_v39 = vmul.f32 0.35355338, %v2004_v7  ;;  %v2818_v40 = vpop.f32.mrb[59].mxu1  ;;  %v2010_v41 = vadd.f32 %v2008_v31, %v3200_v50 }
0x1091   :  { %v2012_v42 = vsel %vm208_vm5, %v2010_v41, -inf  ;;  %v2011_v8 = vadd.f32 %v2009_v39, %v3202_v54 }
0x1092   :  { %2013 = vmax.xlane.f32.xlu1 %v2012_v42 }
0x1093   :  { %v2015_v59 = vsel %vm208_vm5, %v2011_v8, -inf }
0x1094   :  { %2016 = vmax.xlane.f32.xlu0 %v2015_v59  ;;  %v2126_v43 = vpop.f32.mrb[60].mxu1 }
0x1095   :  { %v2133_v44 = vmul.f32 0.35355338, %v2126_v43  ;;  %v2829_v45 = vpop.f32.mrb[61].mxu1 }
0x1096   :  { %v2129_v48 = vpop.f32.mrb[62].mxu1 }
0x1097   :  { %v2134_v49 = vmul.f32 0.35355338, %v2129_v48  ;;  %v2830_v52 = vpop.f32.mrb[63].mxu1  ;;  %v2135_v62 = vadd.f32 %v2133_v44, %v3200_v50 }
0x1099   :  { %v2137_v53 = vsel %vm208_vm5, %v2135_v62, -inf  ;;  %v2136_v55 = vadd.f32 %v2134_v49, %v3202_v54 }
0x109a   :  { %2138 = vmax.xlane.f32.xlu1 %v2137_v53 }
0x109b   :  { %v2140_v56 = vsel %vm208_vm5, %v2136_v55, -inf }
0x109c   :  { %2141 = vmax.xlane.f32.xlu0 %v2140_v56 }
0x10ab   :  { %1785 = vrot.lane.b32.xlu1 %v3558_v29, %s3064_s0 }
0x110f   :  { %v1764_v57 = vpop.xlane.xlu0 %1763 }
0x1110   :  { %v1768_v61 = vsub.f32 %v1760_v17, %v1764_v57 }
0x1111   :  { %v1767_v63 = vpop.xlane.xlu1 %1766 }
0x1112   :  { %v1770_v0 = vmul.f32 1.442695, %v1768_v61  ;;  %v1769_v4 = vsub.f32 %v1761_v30, %v1767_v63 }
0x1114   :  { %3008 = vpow2.f32 %v1770_v0  ;;  %v1772_v1 = vmul.f32 1.442695, %v1769_v4 }
0x1116   :  { %3010 = vpow2.f32 %v1772_v1 }
0x1117   :  { %v1889_v50 = vpop.xlane.xlu0 %1888 }
0x1118   :  { %v1893_v9 = vsub.f32 %v1885_v27, %v1889_v50 }
0x111a   :  { %v1895_v10 = vmul.f32 1.442695, %v1893_v9 }
0x111b   :  { %v1892_v60 = vpop.xlane.xlu0 %1891 }
0x111c   :  { %3012 = vpow2.f32 %v1895_v10  ;;  %v1894_v54 = vsub.f32 %v1886_v34, %v1892_v60 }
0x111e   :  { %v3009_v12 = vpop.eup %3008  ;;  %v1897_v13 = vmul.f32 1.442695, %v1894_v54 }
0x111f   :  { %v2014_v24 = vpop.xlane.xlu1 %2013  ;;  %v1774_v14 = vsel %vm208_vm5, %v3009_v12, 0.0 }
0x1120   :  { %v3011_v15 = vpop.eup %3010  ;;  %3014 = vpow2.f32 %v1897_v13  ;;  %v2018_v17 = vsub.f32 %v2010_v41, %v2014_v24  ;;  %1775 = vadd.xlane.f32.xlu1 %v1774_v14 }
0x1121   :  { %v2017_v51 = vpop.xlane.xlu0 %2016  ;;  %v1777_v30 = vsel %vm208_vm5, %v3011_v15, 0.0 }
0x1122   :  { %v2020_v18 = vmul.f32 1.442695, %v2018_v17  ;;  %v2019_v16 = vsub.f32 %v2011_v8, %v2017_v51  ;;  %1778 = vadd.xlane.f32.xlu0 %v1777_v30 }
0x1124   :  { %3016 = vpow2.f32 %v2020_v18  ;;  %v2022_v19 = vmul.f32 1.442695, %v2019_v16 }
0x1126   :  { %v3013_v20 = vpop.eup %3012  ;;  %3018 = vpow2.f32 %v2022_v19 }
0x1127   :  { %v2139_v21 = vpop.xlane.xlu1 %2138  ;;  %v1899_v22 = vsel %vm208_vm5, %v3013_v20, 0.0 }
0x1128   :  { %v2143_v26 = vsub.f32 %v2135_v62, %v2139_v21  ;;  %1900 = vadd.xlane.f32.xlu1 %v1899_v22 }
0x1129   :  { %v2142_v27 = vpop.xlane.xlu0 %2141 }
0x112a   :  { %v3015_v33 = vpop.eup %3014  ;;  %v2145_v34 = vmul.f32 1.442695, %v2143_v26  ;;  %v2144_v37 = vsub.f32 %v2136_v55, %v2142_v27 }
0x112b   :  { %v1786_v31 = vpop.permute.xlu1 %1785  ;;  %v1902_v32 = vsel %vm208_vm5, %v3015_v33, 0.0 }
0x112c   :  { %3020 = vpow2.f32 %v2145_v34  ;;  %v2147_v38 = vmul.f32 1.442695, %v2144_v37  ;;  %2796 = vmatpush3.bf16.msra.mxu0 %v1786_v31  ;;  %1903 = vadd.xlane.f32.xlu0 %v1902_v32 }
0x112d   :  { %2807 = vmatprep.subr.bf16.mxu0 %v3050_v3 }
0x112e   :  { %v3017_v7 = vpop.eup %3016  ;;  %3022 = vpow2.f32 %v2147_v38 }
0x112f   :  { %v2024_v39 = vsel %vm208_vm5, %v3017_v7, 0.0 }
0x1130   :  { %v3019_v40 = vpop.eup %3018  ;;  %2025 = vadd.xlane.f32.xlu1 %v2024_v39 }
0x1131   :  { %v2027_v41 = vsel %vm208_vm5, %v3019_v40, 0.0 }
0x1132   :  { %2028 = vadd.xlane.f32.xlu0 %v2027_v41 }
0x1136   :  { %v3021_v42 = vpop.eup %3020 }
0x1137   :  { %v2149_v8 = vsel %vm208_vm5, %v3021_v42, 0.0 }
0x1138   :  { %v3023_v59 = vpop.eup %3022  ;;  %2150 = vadd.xlane.f32.xlu1 %v2149_v8 }
0x1139   :  { %v2152_v43 = vsel %vm208_vm5, %v3023_v59, 0.0 }
0x113a   :  { %2153 = vadd.xlane.f32.xlu0 %v2152_v43 }
0x1149   :  { %2035 = vrot.lane.b32.xlu1 %v3558_v29, %s3065_s13 }
0x114d   :  { %2160 = vrot.lane.b32.xlu1 %v3558_v29, %s3066_s14 }
0x1150   :  { %1910 = vrot.lane.b32.xlu0 %v3558_v29, %s3067_s15 }
0x1154   :  { %2240 = vrot.lane.b32.xlu0 %v3503_v28, %s3060_s22 }
0x11ad   :  { %v1776_v44 = vpop.xlane.xlu1 %1775 }
0x11ae   :  { %3024 = vrcp.f32 %v1776_v44 }
0x11af   :  { %v1779_v45 = vpop.xlane.xlu0 %1778 }
0x11b0   :  { %3026 = vrcp.f32 %v1779_v45 }
0x11b5   :  { %v1901_v55 = vpop.xlane.xlu1 %1900 }
0x11b8   :  { %v3025_v48 = vpop.eup %3024 }
0x11b9   :  { %v1904_v49 = vpop.xlane.xlu0 %1903  ;;  %v1782_v62 = vmul.f32 %v3025_v48, %v3009_v12 }
0x11ba   :  { %v3027_v52 = vpop.eup %3026  ;;  %3028 = vrcp.f32 %v1904_v49 }
0x11bb   :  { %v1783_v53 = vmul.f32 %v3027_v52, %v3011_v15  ;;  %3030 = vrcp.f32 %v1901_v55 }
0x11bd   :  { %v1784_v56 = vpack.c.bf16 %v1783_v53, %v1782_v62  ;;  %v2026_v28 = vpop.xlane.xlu1 %2025 }
0x11bf   :  { %2798 = vmatmul.mubr.msk.bf16.vlgmr.msra.gmra.mrb[48].mxu0 %vm208_vm5, %v1784_v56  ;;  %v2029_v29 = vpop.xlane.xlu0 %2028 }
0x11c0   :  { %2809 = vmatprep.mubr.msk.bf16.mxu0 %vm3051_vm0, %v3050_v3  ;;  %3032 = vrcp.f32 %v2029_v29 }
0x11c1   :  { %3034 = vrcp.f32 %v2026_v28 }
0x11c4   :  { %v3029_v57 = vpop.eup %3028 }
0x11c5   :  { %v3031_v63 = vpop.eup %3030  ;;  %v1908_v0 = vmul.f32 %v3029_v57, %v3015_v33  ;;  %v2151_v4 = vpop.xlane.xlu1 %2150 }
0x11c6   :  { %v1907_v1 = vmul.f32 %v3031_v63, %v3013_v20 }
0x11c7   :  { %v2154_v61 = vpop.xlane.xlu0 %2153 }
0x11c8   :  { %3036 = vrcp.f32 %v2154_v61  ;;  %v1909_v9 = vpack.c.bf16 %v1908_v0, %v1907_v1 }
0x11c9   :  { %3038 = vrcp.f32 %v2151_v4  ;;  %v2036_v60 = vpop.permute.xlu1 %2035 }
0x11ca   :  { %v3033_v10 = vpop.eup %3032 }
0x11cb   :  { %v1911_v50 = vpop.permute.xlu0 %1910  ;;  %v3035_v54 = vpop.eup %3034  ;;  %v2033_v12 = vmul.f32 %v3033_v10, %v3019_v40 }
0x11cc   :  { %2808 = vmatpush3.bf16.msra.mxu0 %v1911_v50  ;;  %v2032_v13 = vmul.f32 %v3035_v54, %v3017_v7 }
0x11cd   :  { %2819 = vmatprep.subr.bf16.mxu0 %v3050_v3  ;;  %v2161_v15 = vpop.permute.xlu1 %2160 }
0x11ce   :  { %v2034_v24 = vpack.c.bf16 %v2033_v12, %v2032_v13 }
0x11cf   :  { %2810 = vmatmul.mubr.msk.bf16.vlgmr.msra.gmra.mrb[52].mxu0 %vm208_vm5, %v1909_v9  ;;  %v2241_v22 = vpop.permute.xlu0 %2240 }
0x11d0   :  { %2820 = vmatpush3.bf16.msra.mxu0 %v2036_v60  ;;  %2821 = vmatprep.mubr.msk.bf16.mxu0 %vm3051_vm0, %v3050_v3 }
0x11d1   :  { %2831 = vmatprep.subr.bf16.mxu0 %v3050_v3  ;;  %2838 = vmatpush3.bf16.msra.mxu1 %v2241_v22  ;;  %v2518_v22 = vld [vmem:[%s3789_s4 + $0x38] sm:$0xff] }
0x11d2   :  { %v3037_v14 = vpop.eup %3036  ;;  %2839 = vmatprep.subr.bf16.mxu1 %v3050_v3 }
0x11d3   :  { %v3039_v17 = vpop.eup %3038  ;;  %v2158_v51 = vmul.f32 %v3037_v14, %v3023_v59 }
0x11d4   :  { %v2157_v30 = vmul.f32 %v3039_v17, %v3021_v42 }
0x11d6   :  { %v2159_v18 = vpack.c.bf16 %v2158_v51, %v2157_v30 }
0x11d7   :  { %2822 = vmatmul.mubr.msk.bf16.vlgmr.msra.gmra.mrb[56].mxu0 %vm208_vm5, %v2034_v24 }
0x11d8   :  { %2832 = vmatpush3.bf16.msra.mxu0 %v2161_v15  ;;  %2833 = vmatprep.mubr.msk.bf16.mxu0 %vm3051_vm0, %v3050_v3 }
0x11d9   :  { %2845 = vmatprep.subr.bf16.mxu0 %v3050_v3 }
0x11df   :  { %2834 = vmatmul.mubr.msk.bf16.vlgmr.msra.gmra.mrb[60].mxu0 %vm208_vm5, %v2159_v18 }
0x11e0   :  { %2849 = vmatprep.mubr.msk.bf16.mxu0 %vm3051_vm0, %v3050_v3 }
0x1292   :  { %v1825_v16 = vpop.f32.mrb[48].mxu0 }
0x1293   :  { %v2799_v19 = vpop.f32.mrb[49].mxu0 }
0x1294   :  { %v1828_v20 = vpop.f32.mrb[50].mxu0  ;;  %v2516_v19 = vld [vmem:[%s3789_s4 + $0x28] sm:$0xff] }
0x1295   :  { %v2800_v21 = vpop.f32.mrb[51].mxu0 }
0x1296   :  { %v2517_v21 = vld [vmem:[%s3789_s4 + $0x30] sm:$0xff] }
0x12a2   :  { %v1950_v26 = vpop.f32.mrb[52].mxu0 }
0x12a3   :  { %v2811_v27 = vpop.f32.mrb[53].mxu0 }
0x12a4   :  { %v1953_v33 = vpop.f32.mrb[54].mxu0 }
0x12a5   :  { %v2913_v34 = vpack.i.bf16 %v1953_v33, %v1950_v26  ;;  %v2812_v37 = vpop.f32.mrb[55].mxu0 }
0x12a7   :  { %2914 = vrot.lane.b32.xlu1 %v2913_v34, %s3061_s23 }
0x12aa   :  { %v2075_v31 = vpop.f32.mrb[56].mxu0 }
0x12ab   :  { %v2823_v32 = vpop.f32.mrb[57].mxu0 }
0x12ac   :  { %v2078_v38 = vpop.f32.mrb[58].mxu0 }
0x12ad   :  { %v2918_v7 = vpack.i.bf16 %v2078_v38, %v2075_v31  ;;  %v2824_v39 = vpop.f32.mrb[59].mxu0 }
0x12af   :  { %2919 = vrot.lane.b32.xlu0 %v2918_v7, %s3062_s24  ;;  %v2321_v7 = vrot.slane %v3489_v25, %v1462_v47  ;;  %v2520_v47 = vld [vmem:[%s3790_s5 + $0x48] sm:$0xff] }
0x12b2   :  { %v2200_v40 = vpop.f32.mrb[60].mxu0 }
0x12b3   :  { %v2835_v41 = vpop.f32.mrb[61].mxu0  ;;  %2242 = vrot.lane.b32.xlu0 %v3516_v46, %s3060_s22 }
0x12b4   :  { %v2203_v42 = vpop.f32.mrb[62].mxu0 }
0x12b5   :  { %v2923_v8 = vpack.i.bf16 %v2203_v42, %v2200_v40  ;;  %v2836_v59 = vpop.f32.mrb[63].mxu0 }
0x12b6   :  { %v2327_v59 = vrot.slane %v3489_v25, %v1468_v6  ;;  %v2521_v6 = vld [vmem:[%s3790_s5 + $0x50] sm:$0xff] }
0x12b7   :  { %2924 = vrot.lane.b32.xlu1 %v2923_v8, %s3063_s25 }
0x1319   :  { %v2915_v44 = vpop.permute.xlu1 %2914 }
0x131a   :  { %v2917_v48 = vunpack.i.h.bf16 %v2915_v44  ;;  %v2916_v49 = vunpack.i.l.bf16 %v2915_v44 }
0x131c   :  { %v2232_v55 = vsel %vm156_vm2, %v1828_v20, %v2917_v48  ;;  %v2231_v46 = vsel %vm156_vm2, %v1825_v16, %v2916_v49  ;;  %v2515_v16 = vld [vmem:[%s3789_s4 + $0x20] sm:$0xff] }
0x131d   :  { %v1607_v20 = vpack.c.bf16 %v2516_v19, %v2515_v16  ;;  %v2519_v49 = vld [vmem:[%s3790_s5 + $0x40] sm:$0xff] }
0x131f   :  { %2846 = vmatpush3.bf16.msra.mxu0 %v1607_v20 }
0x1320   :  { %2847 = vmatprep.subr.bf16.mxu0 %v3050_v3 }
0x1321   :  { %v2920_v43 = vpop.permute.xlu0 %2919 }
0x1322   :  { %v2922_v52 = vunpack.i.h.bf16 %v2920_v43  ;;  %v2921_v62 = vunpack.i.l.bf16 %v2920_v43 }
0x1324   :  { %v2234_v28 = vsel %vm208_vm5, %v2232_v55, %v2922_v52  ;;  %v2233_v57 = vsel %vm208_vm5, %v2231_v46, %v2921_v62  ;;  %v1618_v52 = vpack.c.bf16 %v2520_v47, %v2519_v49  ;;  %v2522_v62 = vld [vmem:[%s3790_s5 + $0x58] sm:$0xff]  ;;  %v2523_v55 = vld [vmem:[%s3790_s5 + $0x60] sm:$0xff]  ;;  %v2524_v46 = vld [vmem:[%s3790_s5 + $0x68] sm:$0xff] }
0x1325   :  { %v2243_v45 = vpop.permute.xlu0 %2242 }
0x1326   :  { %2840 = vmatpush3.bf16.msra.mxu1 %v2243_v45 }
0x1327   :  { %2853 = vmatprep.subr.bf16.mxu1 %v3050_v3 }
0x1329   :  { %v2925_v53 = vpop.permute.xlu1 %2924 }
0x132a   :  { %v2927_v56 = vunpack.i.h.bf16 %v2925_v53  ;;  %v2926_v29 = vunpack.i.l.bf16 %v2925_v53  ;;  %v1619_v53 = vpack.c.bf16 %v2522_v62, %v2521_v6 }
0x132c   :  { %v2236_v61 = vsel %vm684_vm6, %v2234_v28, %v2927_v56  ;;  %v2235_v63 = vsel %vm684_vm6, %v2233_v57, %v2926_v29  ;;  %v1620_v56 = vpack.c.bf16 %v2524_v46, %v2523_v55  ;;  %v2525_v29 = vld [vmem:[%s3790_s5 + $0x70] sm:$0xff]  ;;  %v2526_v28 = vld [vmem:[%s3790_s5 + $0x78] sm:$0xff] }
0x132d   :  { %v2237_v0 = vpack.c.bf16 %v2236_v61, %v2235_v63  ;;  %v1621_v57 = vpack.c.bf16 %v2526_v28, %v2525_v29  ;;  %v2334_v61 = vrot.slane %v3489_v25, %v1475_v5 }
0x132f   :  { %2842 = vmatmul.mubr.msk.bf16.vlgmr.msra.gmra.mrb[64].mxu1 %vm56_vm1, %v2237_v0 }
0x1330   :  { %2861 = vmatprep.mubr.msk.bf16.mxu1 %vm3051_vm0, %v3050_v3  ;;  %2854 = vmatpush3.bf16.msra.mxu1 %v1618_v52 }
0x1331   :  { %2855 = vmatprep.subr.bf16.mxu1 %v3050_v3 }
0x1334   :  { %2856 = vmatpush3.bf16.msra.mxu1 %v1619_v53 }
0x1335   :  { %2857 = vmatprep.subr.bf16.mxu1 %v3050_v3 }
0x1338   :  { %2858 = vmatpush3.bf16.msra.mxu1 %v1620_v56 }
0x1339   :  { %2859 = vmatprep.subr.bf16.mxu1 %v3050_v3 }
0x133c   :  { %2860 = vmatpush3.bf16.msra.mxu1 %v1621_v57 }
0x1402   :  { %v2283_v4 = vpop.f32.mrb[64].mxu1 }
0x1403   :  { %v3680_v1 = vadd.f32 %v2283_v4, %v3451_v35  ;;  %v2843_v50 = vpop.f32.mrb[65].mxu1 }
0x1404   :  { %v2286_v9 = vpop.f32.mrb[66].mxu1 }
0x1405   :  { %v3683_v10 = vadd.f32 %v2286_v9, %v3440_v23  ;;  %v2844_v60 = vpop.f32.mrb[67].mxu1  ;;  %v2292_v54 = vsel %vm56_vm1, %v3680_v1, 0.0 }
0x1406   :  { %2293 = vadd.xlane.f32.xlu1 %v2292_v54 }
0x1407   :  { %v2295_v12 = vsel %vm56_vm1, %v3683_v10, 0.0 }
0x1408   :  { %2296 = vadd.xlane.f32.xlu0 %v2295_v12 }
0x1493   :  { %v2294_v13 = vpop.xlane.xlu1 %2293 }
0x1494   :  { %v2298_v24 = vmul.f32 0.03125, %v2294_v13 }
0x1495   :  { %v2297_v14 = vpop.xlane.xlu0 %2296 }
0x1496   :  { %v2300_v35 = vsub.f32 %v3680_v1, %v2298_v24  ;;  %v2299_v15 = vmul.f32 0.03125, %v2297_v14 }
0x1498   :  { %v2301_v17 = vsub.f32 %v3683_v10, %v2299_v15  ;;  %v2302_v51 = vmul.f32 %v2300_v35, %v2300_v35 }
0x149a   :  { %v2304_v23 = vsel %vm56_vm1, %v2302_v51, 0.0  ;;  %v2303_v30 = vmul.f32 %v2301_v17, %v2301_v17 }
0x149b   :  { %2305 = vadd.xlane.f32.xlu0 %v2304_v23 }
0x149c   :  { %v2307_v18 = vsel %vm56_vm1, %v2303_v30, 0.0 }
0x149d   :  { %2308 = vadd.xlane.f32.xlu1 %v2307_v18 }
0x14ae   :  { %2465 = vrot.lane.b32.xlu1 %v3611_v11, %s3064_s0 }
0x14b1   :  { %2454 = vrot.lane.b32.xlu0 %v3603_v2, %s3060_s22  ;;  %v1608_v2 = vpack.c.bf16 %v2518_v22, %v2517_v21 }
0x14b3   :  { %2848 = vmatpush3.bf16.msra.mxu0 %v1608_v2  ;;  %v2447_v2 = vrot.slane %v3489_v25, %v1589_v58 }
0x1528   :  { %v2306_v26 = vpop.xlane.xlu0 %2305 }
0x1529   :  { %v2310_v27 = vmul.f32 0.03125, %v2306_v26 }
0x152a   :  { %v2309_v33 = vpop.xlane.xlu1 %2308 }
0x152b   :  { %v2312_v34 = vadd.f32 1e-05, %v2310_v27  ;;  %v2311_v37 = vmul.f32 0.03125, %v2309_v33 }
0x152c   :  { %v2455_v31 = vpop.permute.xlu0 %2454 }
0x152d   :  { %3040 = vrsqrt.f32 %v2312_v34  ;;  %v2313_v32 = vadd.f32 1e-05, %v2311_v37  ;;  %2458 = vst.msk [vmem:[%s3791_s7 - $0x4] sm:$0xf0] %vm2457_vm9, %v2455_v31 }
0x152e   :  { %v2466_v38 = vpop.permute.xlu1 %2465 }
0x152f   :  { %3042 = vrsqrt.f32 %v2313_v32  ;;  %2469 = vst.msk [vmem:[%s3791_s7] sm:$0xf] %vm2468_vm10, %v2466_v38 }
0x1537   :  { %v3041_v39 = vpop.eup %3040 }
0x1538   :  { %v2316_v40 = vmul.f32 %v3041_v39, %v2300_v35 }
0x1539   :  { %v3043_v41 = vpop.eup %3042 }
0x153a   :  { %v2322_v42 = vmul.f32 %v2321_v7, %v2316_v40  ;;  %v2317_v8 = vmul.f32 %v3043_v41, %v2301_v17 }
0x153c   :  { %v2323_v43 = vmul.f32 %v2321_v7, %v2317_v8  ;;  %v2328_v44 = vadd.f32 %v2327_v59, %v2322_v42 }
0x153e   :  { %v2329_v45 = vadd.f32 %v2327_v59, %v2323_v43 }
0x1540   :  { %v2330_v48 = vpack.c.bf16 %v2329_v45, %v2328_v44 }
0x1542   :  { %2850 = vmatmul.mubr.msk.bf16.vlgmr.msra.gmra.mrb[64].mxu0 %vm56_vm1, %v2330_v48 }
0x1615   :  { %v2372_v63 = vpop.f32.mrb[64].mxu0 }
0x1616   :  { %v2373_v0 = vadd.f32 %v2372_v63, %v2334_v61  ;;  %v2851_v4 = vpop.f32.mrb[65].mxu0 }
0x1617   :  { %v2375_v50 = vpop.f32.mrb[66].mxu0 }
0x1618   :  { %v2379_v9 = vmul.f32 %v2373_v0, %v2373_v0  ;;  %v2376_v3 = vadd.f32 %v2375_v50, %v2334_v61  ;;  %v2852_v60 = vpop.f32.mrb[67].mxu0 }
0x161a   :  { %v2381_v54 = vmul.f32 %v2379_v9, %v2373_v0  ;;  %v2380_v12 = vmul.f32 %v2376_v3, %v2376_v3 }
0x161c   :  { %v2383_v13 = vmul.f32 0.044715, %v2381_v54  ;;  %v2382_v24 = vmul.f32 %v2380_v12, %v2376_v3 }
0x161e   :  { %v2385_v14 = vadd.f32 %v2383_v13, %v2373_v0  ;;  %v2384_v35 = vmul.f32 0.044715, %v2382_v24 }
0x1620   :  { %v2387_v15 = vmul.f32 0.7978846, %v2385_v14  ;;  %v2386_v17 = vadd.f32 %v2384_v35, %v2376_v3 }
0x1622   :  { %3044 = vtanh.f32 %v2387_v15  ;;  %v2388_v51 = vmul.f32 0.7978846, %v2386_v17 }
0x1624   :  { %3046 = vtanh.f32 %v2388_v51 }
0x162c   :  { %v3045_v23 = vpop.eup %3044 }
0x162d   :  { %v2391_v5 = vadd.f32 1.0, %v3045_v23 }
0x162e   :  { %v3047_v30 = vpop.eup %3046 }
0x162f   :  { %v2393_v18 = vmul.f32 0.5, %v2391_v5  ;;  %v2392_v16 = vadd.f32 1.0, %v3047_v30 }
0x1631   :  { %v2394_v19 = vmul.f32 0.5, %v2392_v16  ;;  %v2395_v20 = vmul.f32 %v2393_v18, %v2373_v0 }
0x1633   :  { %v2396_v21 = vmul.f32 %v2394_v19, %v2376_v3 }
0x1635   :  { %v2397_v22 = vpack.c.bf16 %v2396_v21, %v2395_v20 }
0x1637   :  { %2862 = vmatmul.mubr.msk.bf16.vlgmr.msra.gmra.mrb[68].mxu1 %vm1540_vm7, %v2397_v22 }
0x170a   :  { %v2435_v26 = vpop.f32.mrb[68].mxu1 }
0x170b   :  { %v2442_v27 = vadd.f32 %v2435_v26, %v3680_v1  ;;  %v2863_v33 = vpop.f32.mrb[69].mxu1 }
0x170c   :  { %v2438_v34 = vpop.f32.mrb[70].mxu1 }
0x170d   :  { %v2448_v37 = vadd.f32 %v2447_v2, %v2442_v27  ;;  %v2443_v31 = vadd.f32 %v2438_v34, %v3683_v10  ;;  %v2864_v32 = vpop.f32.mrb[71].mxu1 }
0x170f   :  { %2452 = vst.msk [vmem:[%s3791_s7 + $0x4] sm:$0xf] %vm2450_vm8, %v2448_v37  ;;  %v2449_v38 = vadd.f32 %v2447_v2, %v2443_v31  ;;  %2460 = vrot.lane.b32.xlu1 %v2448_v37, %s3060_s22 }
0x1711   :  { %2471 = vrot.lane.b32.xlu0 %v2449_v38, %s3064_s0 }
0x1713   :  { %2475 = vrot.lane.b32.xlu1 %v3611_v11, %s3052_s9 }
0x1715   :  { %2480 = vrot.lane.b32.xlu0 %v2449_v38, %s3052_s9 }
0x1781   :  { %v2461_v36 = vpop.permute.xlu1 %2460 }
0x1782   :  { %2463 = vst.msk [vmem:[%s3791_s7] sm:$0xf0] %vm2457_vm9, %v2461_v36 }
0x1783   :  { %v2472_v25 = vpop.permute.xlu0 %2471 }
0x1784   :  { %2474 = vst.msk [vmem:[%s3791_s7 + $0x4] sm:$0xf] %vm2468_vm10, %v2472_v25 }
0x1785   :  { %v2476_v58 = vpop.permute.xlu1 %2475 }
0x1786   :  { %2479 = vst.msk [vmem:[%s3791_s7 - $0x4] sm:$0xf0] %vm2478_vm11, %v2476_v58 }
0x1787   :  { %v2481_v11 = vpop.permute.xlu0 %2480 }
0x1788   :  { %2483 = vst.msk [vmem:[%s3791_s7] sm:$0xf0] %vm2478_vm11, %v2481_v11 }

</bundles_post_ra>
